<compile_context>
chip_gen: v7x
topology: tpu7x:2x2x1
jax: 0.10.0
libtpu: 0.0.40
codegen_flags: <defaults>
</compile_context>

<pallas_src>
import jax
import jax.numpy as jnp
from jax.experimental import pallas as pl
from jax.experimental.pallas import tpu as pltpu

IN_F = 6      # fc1 input features
N1 = 256      # fc1 output features
N2 = 128      # fc2 output features
N_OUT = 2     # fc3 output features (true)
N3P = 8       # fc3 output rows, padded to one full sublane group


def simple_nn_kernel(xT_ref, w1T_ref, b1_ref, w2T_ref, b2_ref, w3T_ref, b3_ref,
                     outT_ref):
    xT = xT_ref[...]                      # (6, TB)    f32
    w1T = w1T_ref[...]                    # (256, 6)   f32 (PyTorch [out, in])

    # ---- fc1 + ReLU on the VPU: K=6 would waste the MXU (K padded to 128),
    # so do 6 broadcast-FMA updates instead (unrolled at trace time).
    h1 = b1_ref[...] + w1T[:, 0:1] * xT[0:1, :]
    for k in range(1, IN_F):
        h1 = h1 + w1T[:, k:k + 1] * xT[k:k + 1, :]
    h1 = jnp.maximum(h1, 0.0)             # (256, TB) f32

    # ---- fc2 + ReLU: f32 MXU matmul, f32 accumulation (compute has slack).
    h2 = jnp.dot(w2T_ref[...], h1, preferred_element_type=jnp.float32)
    h2 = jnp.maximum(h2 + b2_ref[...], 0.0)           # (128, TB) f32

    # ---- fc3: output rows zero-padded 2 -> 8; store is lane-dense (8, TB).
    y = jnp.dot(w3T_ref[...], h2, preferred_element_type=jnp.float32)
    outT_ref[...] = (y + b3_ref[...]).astype(outT_ref.dtype)   # (8, TB)


def _round_up(n, m):
    return ((n + m - 1) // m) * m


def simple_nn_forward(x, params, *, max_tile=2048):
    """x: [B, 6] float32. params: kernel-layout weights (see init_params)."""
    w1T, b1 = params["w1T"], params["b1"]
    w2T, b2 = params["w2T"], params["b2"]
    w3T, b3 = params["w3T"], params["b3"]

    B = x.shape[0]
    # Balanced, lane-aligned (multiple-of-128) batch tiles.  Force >= 2 grid
    # steps when there is enough work so v7x's two TensorCores both run
    # (the batch axis is marked "parallel"); v5e/v6e just see two steps.
    num_tiles = max(pl.cdiv(B, max_tile), 2 if B >= 2 * 128 else 1)
    TB = _round_up(pl.cdiv(B, num_tiles), 128)
    Bp = num_tiles * TB

    # Feature-major input; ragged batch zero-padded (junk columns are sliced
    # off below -- the slice is mandatory).
    xT = x.T
    if Bp != B:
        xT = jnp.pad(xT, ((0, 0), (0, Bp - B)))

    const = lambda i: (0, 0)              # weights stay VMEM-resident

    # Explicit scoped-VMEM budget: f32 intermediates (h1/h2/y ~ (392)*TB*4 B),
    # double-buffered x^T / out^T tiles, resident weights + headroom.  32 MiB
    # comfortably covers TB up to ~8192 and leaves headroom on v7x (64 MiB/TC);
    # it also lifts v5e's 16 MiB default so larger tiles are not clamped.
    vmem_bytes = 32 * 1024 * 1024

    outT = pl.pallas_call(
        simple_nn_kernel,
        out_shape=jax.ShapeDtypeStruct((N3P, Bp), jnp.float32),
        grid=(num_tiles,),
        in_specs=[
            pl.BlockSpec((IN_F, TB), lambda i: (0, i)),   # x^T  (streamed)
            pl.BlockSpec((N1, IN_F), const),              # w1^T (f32, VPU path)
            pl.BlockSpec((N1, 1), const),                 # b1
            pl.BlockSpec((N2, N1), const),                # w2^T (f32, MXU)
            pl.BlockSpec((N2, 1), const),                 # b2
            pl.BlockSpec((N3P, N2), const),               # w3^T (rows padded)
            pl.BlockSpec((N3P, 1), const),                # b3   (rows padded)
        ],
        out_specs=pl.BlockSpec((N3P, TB), lambda i: (0, i)),
        compiler_params=pltpu.CompilerParams(
            dimension_semantics=("parallel",),
            vmem_limit_bytes=vmem_bytes),
    )(xT, w1T, b1, w2T, b2, w3T, b3)

    # Mandatory: drop the padded output rows (2->8) and padded batch columns.
    return outT[:N_OUT, :B].T


def init_params(key):
    """PyTorch-style init; stored in PyTorch [out, in] layout (feature-major)."""
    ks = jax.random.split(key, 6)

    def linear(kw, kb, fan_in, fan_out):
        bound = float(fan_in) ** -0.5   # U(-1/sqrt(fan_in), 1/sqrt(fan_in))
        wT = jax.random.uniform(kw, (fan_out, fan_in), jnp.float32,
                                minval=-bound, maxval=bound)
        b = jax.random.uniform(kb, (fan_out, 1), jnp.float32,
                               minval=-bound, maxval=bound)
        return wT, b

    w1T, b1 = linear(ks[0], ks[1], IN_F, N1)
    w2T, b2 = linear(ks[2], ks[3], N1, N2)
    w3T, b3 = linear(ks[4], ks[5], N2, N_OUT)

    # fc3 weight/bias rows zero-padded 2 -> 8 (one full sublane group).
    w3Tp = jnp.zeros((N3P, N2), jnp.float32).at[:N_OUT, :].set(w3T)
    b3p = jnp.zeros((N3P, 1), jnp.float32).at[:N_OUT, :].set(b3)
    return {"w1T": w1T, "b1": b1, "w2T": w2T, "b2": b2, "w3T": w3Tp, "b3": b3p}


def reference_forward(x, p):
    """True f32 reference (matches the PyTorch SimpleNN forward)."""
    h1 = jnp.maximum(x @ p["w1T"].T + p["b1"].T, 0.0)
    h2 = jnp.maximum(h1 @ p["w2T"].T + p["b2"].T, 0.0)
    y = h2 @ p["w3T"][:N_OUT].T + p["b3"][:N_OUT].T
    return y


if __name__ == "__main__":
    key = jax.random.PRNGKey(0)
    kx, kx2, kp = jax.random.split(key, 3)
    params = init_params(kp)

    # Small batch (single tile, ragged -> padded to 128 columns).
    batch = 8
    x = jax.random.normal(kx, (batch, IN_F), dtype=jnp.float32)
    out = jax.block_until_ready(simple_nn_forward(x, params))
    ref = reference_forward(x, params)
    assert out.shape == (batch, N_OUT)
    assert jnp.allclose(out, ref, atol=1e-2, rtol=1e-2), (
        float(jnp.max(jnp.abs(out - ref))))

    # Larger ragged batch (exercises >= 2 grid steps + balanced tiling).
    batch2 = 333
    x2 = jax.random.normal(kx2, (batch2, IN_F), dtype=jnp.float32)
    out2 = jax.block_until_ready(simple_nn_forward(x2, params))
    ref2 = reference_forward(x2, params)
    assert out2.shape == (batch2, N_OUT)
    assert jnp.allclose(out2, ref2, atol=1e-2, rtol=1e-2), (
        float(jnp.max(jnp.abs(out2 - ref2))))

    print("KERNEL_OK")
</pallas_src>

<mosaic_0001>
module attributes {stable_mosaic.version = 11 : i64} {
  func.func @simple_nn_kernel(%arg0: i32, %arg1: memref<6x128xf32, #tpu.memory_space<vmem>>, %arg2: memref<256x6xf32, #tpu.memory_space<vmem>>, %arg3: memref<256x1xf32, #tpu.memory_space<vmem>>, %arg4: memref<128x256xf32, #tpu.memory_space<vmem>>, %arg5: memref<128x1xf32, #tpu.memory_space<vmem>>, %arg6: memref<8x128xf32, #tpu.memory_space<vmem>>, %arg7: memref<8x1xf32, #tpu.memory_space<vmem>>, %arg8: memref<8x128xf32, #tpu.memory_space<vmem>>) attributes {dimension_semantics = [#tpu.dimension_semantics<parallel>], iteration_bounds = array<i64: 1>, scalar_prefetch = 0 : i64, scratch_operands = 0 : i64, tpu.core_type = #tpu.core_type<tc>, window_params = [{transform_indices = @transform_0, window_bounds = array<i64: 6, 128>}, {pipeline_mode = #tpu.pipeline_mode<synchronous>, transform_indices = @transform_1, window_bounds = array<i64: 256, 6>}, {pipeline_mode = #tpu.pipeline_mode<synchronous>, transform_indices = @transform_2, window_bounds = array<i64: 256, 1>}, {pipeline_mode = #tpu.pipeline_mode<synchronous>, transform_indices = @transform_3, window_bounds = array<i64: 128, 256>}, {pipeline_mode = #tpu.pipeline_mode<synchronous>, transform_indices = @transform_4, window_bounds = array<i64: 128, 1>}, {pipeline_mode = #tpu.pipeline_mode<synchronous>, transform_indices = @transform_5, window_bounds = array<i64: 8, 128>}, {pipeline_mode = #tpu.pipeline_mode<synchronous>, transform_indices = @transform_6, window_bounds = array<i64: 8, 1>}, {transform_indices = @transform_7, window_bounds = array<i64: 8, 128>}]} {
    %c0 = arith.constant 0 : index
    %c0_0 = arith.constant 0 : index
    %0 = vector.load %arg1[%c0, %c0_0] : memref<6x128xf32, #tpu.memory_space<vmem>>, vector<6x128xf32>
    %c0_1 = arith.constant 0 : index
    %c0_2 = arith.constant 0 : index
    %1 = vector.load %arg2[%c0_1, %c0_2] : memref<256x6xf32, #tpu.memory_space<vmem>>, vector<256x6xf32>
    %c0_3 = arith.constant 0 : index
    %c0_4 = arith.constant 0 : index
    %2 = vector.load %arg3[%c0_3, %c0_4] : memref<256x1xf32, #tpu.memory_space<vmem>>, vector<256x1xf32>
    %3 = vector.extract_strided_slice %1 {offsets = [0, 0], sizes = [256, 1], strides = [1, 1]} : vector<256x6xf32> to vector<256x1xf32>
    %4 = vector.extract_strided_slice %0 {offsets = [0, 0], sizes = [1, 128], strides = [1, 1]} : vector<6x128xf32> to vector<1x128xf32>
    %5 = vector.broadcast %3 : vector<256x1xf32> to vector<256x128xf32>
    %6 = vector.broadcast %4 : vector<1x128xf32> to vector<256x128xf32>
    %7 = arith.mulf %5, %6 : vector<256x128xf32>
    %8 = vector.broadcast %2 : vector<256x1xf32> to vector<256x128xf32>
    %9 = arith.addf %8, %7 : vector<256x128xf32>
    %10 = vector.extract_strided_slice %1 {offsets = [0, 1], sizes = [256, 1], strides = [1, 1]} : vector<256x6xf32> to vector<256x1xf32>
    %11 = vector.extract_strided_slice %0 {offsets = [1, 0], sizes = [1, 128], strides = [1, 1]} : vector<6x128xf32> to vector<1x128xf32>
    %12 = vector.broadcast %10 : vector<256x1xf32> to vector<256x128xf32>
    %13 = vector.broadcast %11 : vector<1x128xf32> to vector<256x128xf32>
    %14 = arith.mulf %12, %13 : vector<256x128xf32>
    %15 = arith.addf %9, %14 : vector<256x128xf32>
    %16 = vector.extract_strided_slice %1 {offsets = [0, 2], sizes = [256, 1], strides = [1, 1]} : vector<256x6xf32> to vector<256x1xf32>
    %17 = vector.extract_strided_slice %0 {offsets = [2, 0], sizes = [1, 128], strides = [1, 1]} : vector<6x128xf32> to vector<1x128xf32>
    %18 = vector.broadcast %16 : vector<256x1xf32> to vector<256x128xf32>
    %19 = vector.broadcast %17 : vector<1x128xf32> to vector<256x128xf32>
    %20 = arith.mulf %18, %19 : vector<256x128xf32>
    %21 = arith.addf %15, %20 : vector<256x128xf32>
    %22 = vector.extract_strided_slice %1 {offsets = [0, 3], sizes = [256, 1], strides = [1, 1]} : vector<256x6xf32> to vector<256x1xf32>
    %23 = vector.extract_strided_slice %0 {offsets = [3, 0], sizes = [1, 128], strides = [1, 1]} : vector<6x128xf32> to vector<1x128xf32>
    %24 = vector.broadcast %22 : vector<256x1xf32> to vector<256x128xf32>
    %25 = vector.broadcast %23 : vector<1x128xf32> to vector<256x128xf32>
    %26 = arith.mulf %24, %25 : vector<256x128xf32>
    %27 = arith.addf %21, %26 : vector<256x128xf32>
    %28 = vector.extract_strided_slice %1 {offsets = [0, 4], sizes = [256, 1], strides = [1, 1]} : vector<256x6xf32> to vector<256x1xf32>
    %29 = vector.extract_strided_slice %0 {offsets = [4, 0], sizes = [1, 128], strides = [1, 1]} : vector<6x128xf32> to vector<1x128xf32>
    %30 = vector.broadcast %28 : vector<256x1xf32> to vector<256x128xf32>
    %31 = vector.broadcast %29 : vector<1x128xf32> to vector<256x128xf32>
    %32 = arith.mulf %30, %31 : vector<256x128xf32>
    %33 = arith.addf %27, %32 : vector<256x128xf32>
    %34 = vector.extract_strided_slice %1 {offsets = [0, 5], sizes = [256, 1], strides = [1, 1]} : vector<256x6xf32> to vector<256x1xf32>
    %35 = vector.extract_strided_slice %0 {offsets = [5, 0], sizes = [1, 128], strides = [1, 1]} : vector<6x128xf32> to vector<1x128xf32>
    %36 = vector.broadcast %34 : vector<256x1xf32> to vector<256x128xf32>
    %37 = vector.broadcast %35 : vector<1x128xf32> to vector<256x128xf32>
    %38 = arith.mulf %36, %37 : vector<256x128xf32>
    %39 = arith.addf %33, %38 : vector<256x128xf32>
    %cst = arith.constant 0.000000e+00 : f32
    %40 = vector.broadcast %cst : f32 to vector<256x128xf32>
    %41 = arith.maximumf %39, %40 : vector<256x128xf32>
    %c0_5 = arith.constant 0 : index
    %c0_6 = arith.constant 0 : index
    %42 = vector.load %arg4[%c0_5, %c0_6] : memref<128x256xf32, #tpu.memory_space<vmem>>, vector<128x256xf32>
    %cst_7 = arith.constant dense<0.000000e+00> : vector<128x128xf32>
    %43 = tpu.matmul %42, %41, %cst_7 {dimension_numbers = #tpu.dot_dimension_numbers<[1], [0], [0], [1], [0, 0, 1, 1], [], []>} : vector<128x256xf32>, vector<256x128xf32>, vector<128x128xf32> -> vector<128x128xf32>
    %c0_8 = arith.constant 0 : index
    %c0_9 = arith.constant 0 : index
    %44 = vector.load %arg5[%c0_8, %c0_9] : memref<128x1xf32, #tpu.memory_space<vmem>>, vector<128x1xf32>
    %45 = vector.broadcast %44 : vector<128x1xf32> to vector<128x128xf32>
    %46 = arith.addf %43, %45 : vector<128x128xf32>
    %cst_10 = arith.constant 0.000000e+00 : f32
    %47 = vector.broadcast %cst_10 : f32 to vector<128x128xf32>
    %48 = arith.maximumf %46, %47 : vector<128x128xf32>
    %c0_11 = arith.constant 0 : index
    %c0_12 = arith.constant 0 : index
    %49 = vector.load %arg6[%c0_11, %c0_12] : memref<8x128xf32, #tpu.memory_space<vmem>>, vector<8x128xf32>
    %cst_13 = arith.constant dense<0.000000e+00> : vector<8x128xf32>
    %50 = tpu.matmul %49, %48, %cst_13 {dimension_numbers = #tpu.dot_dimension_numbers<[1], [0], [0], [1], [0, 0, 1, 1], [], []>} : vector<8x128xf32>, vector<128x128xf32>, vector<8x128xf32> -> vector<8x128xf32>
    %c0_14 = arith.constant 0 : index
    %c0_15 = arith.constant 0 : index
    %51 = vector.load %arg7[%c0_14, %c0_15] : memref<8x1xf32, #tpu.memory_space<vmem>>, vector<8x1xf32>
    %52 = vector.broadcast %51 : vector<8x1xf32> to vector<8x128xf32>
    %53 = arith.addf %50, %52 : vector<8x128xf32>
    %c0_16 = arith.constant 0 : index
    %c0_17 = arith.constant 0 : index
    %54 = vector.load %arg8[%c0_16, %c0_17] : memref<8x128xf32, #tpu.memory_space<vmem>>, vector<8x128xf32>
    tpu.vector_store %arg8[%c0_16, %c0_17], %53 {strides = array<i32>} : memref<8x128xf32, #tpu.memory_space<vmem>>, vector<8x128xf32>,
    return
  }
  func.func @transform_0(%arg0: i32) -> (i32, i32) {
    %c0_i32 = arith.constant 0 : i32
    %c0_i32_0 = arith.constant 0 : i32
    return %c0_i32, %arg0 : i32, i32
  }
  func.func @transform_1(%arg0: i32) -> (i32, i32) {
    %c0_i32 = arith.constant 0 : i32
    %c0_i32_0 = arith.constant 0 : i32
    %c0_i32_1 = arith.constant 0 : i32
    return %c0_i32, %c0_i32_0 : i32, i32
  }
  func.func @transform_2(%arg0: i32) -> (i32, i32) {
    %c0_i32 = arith.constant 0 : i32
    %c0_i32_0 = arith.constant 0 : i32
    %c0_i32_1 = arith.constant 0 : i32
    return %c0_i32, %c0_i32_0 : i32, i32
  }
  func.func @transform_3(%arg0: i32) -> (i32, i32) {
    %c0_i32 = arith.constant 0 : i32
    %c0_i32_0 = arith.constant 0 : i32
    %c0_i32_1 = arith.constant 0 : i32
    return %c0_i32, %c0_i32_0 : i32, i32
  }
  func.func @transform_4(%arg0: i32) -> (i32, i32) {
    %c0_i32 = arith.constant 0 : i32
    %c0_i32_0 = arith.constant 0 : i32
    %c0_i32_1 = arith.constant 0 : i32
    return %c0_i32, %c0_i32_0 : i32, i32
  }
  func.func @transform_5(%arg0: i32) -> (i32, i32) {
    %c0_i32 = arith.constant 0 : i32
    %c0_i32_0 = arith.constant 0 : i32
    %c0_i32_1 = arith.constant 0 : i32
    return %c0_i32, %c0_i32_0 : i32, i32
  }
  func.func @transform_6(%arg0: i32) -> (i32, i32) {
    %c0_i32 = arith.constant 0 : i32
    %c0_i32_0 = arith.constant 0 : i32
    %c0_i32_1 = arith.constant 0 : i32
    return %c0_i32, %c0_i32_0 : i32, i32
  }
  func.func @transform_7(%arg0: i32) -> (i32, i32) {
    %c0_i32 = arith.constant 0 : i32
    %c0_i32_0 = arith.constant 0 : i32
    return %c0_i32, %arg0 : i32, i32
  }
}

</mosaic_0001>

<bundles_post_ra>
// kernel: tpu_custom_call.1
= control target key start
LH: loop header
LB: loop body
LE: loop exit
PB: predicated region body
PF: predicated region fallthrough
CT: control target
= control target key end

     0   :  { %v3758_v2 = vmov 0   ;;  %s3750_s0 = inlined_call_operand.vmem [shape: f32[6,128], index: 0, kind: input, shape index: {}]   ;;  %s3751_s1 = inlined_call_operand.vmem [shape: f32[256,6], index: 1, kind: input, shape index: {}]   ;;  %s3752_s2 = inlined_call_operand.vmem [shape: f32[256,1], index: 2, kind: input, shape index: {}]   ;;  %s3753_s3 = inlined_call_operand.vmem [shape: f32[128,256], index: 3, kind: input, shape index: {}]   ;;  %s3754_s4 = inlined_call_operand.vmem [shape: f32[128,1], index: 4, kind: input, shape index: {}]   ;;  %s3755_s5 = inlined_call_operand.vmem [shape: f32[8,128], index: 5, kind: input, shape index: {}]   ;;  %s3756_s6 = inlined_call_operand.vmem [shape: f32[8,1], index: 6, kind: input, shape index: {}]   ;;  %s3757_s7 = inlined_call_operand.hbm [shape: f32[8,128], index: 7, kind: output, shape index: {}]  }
   0x1   :  { %v2235_v0 = vld [vmem:[%s3751_s1 + $0x10] sm:$0xff]  ;;  %v2240_v1 = vld [vmem:[%s3751_s1] sm:$0xff]  ;;  %2072 = vset.pattern.permute.xlu1 %v3758_v2  ;;  %2071 = vset.pattern.permute.xlu0 %v3758_v2  ;;  %v2249_v3 = vld [vmem:[%s3751_s1 + $0x18] sm:$0xff] }
   0x2   :  { %104 = vperm.xlu1 %2072, %v2235_v0   ;;  %94 = vperm.xlu0 %2071, %v2240_v1   ;;  %v2254_v4 = vld [vmem:[%s3751_s1 + $0x8] sm:$0xff]  ;;  %v2266_v6 = vld [vmem:[%s3751_s1 + $0x20] sm:$0xff]  ;;  %v2273_v7 = vld [vmem:[%s3751_s1 + $0x38] sm:$0xff] }
   0x3   :  { %v2261_v5 = vld [vmem:[%s3751_s1 + $0x28] sm:$0xff]  ;;  %v2278_v8 = vld [vmem:[%s3751_s1 + $0x30] sm:$0xff]  ;;  %v2290_v10 = vld [vmem:[%s3751_s1 + $0x40] sm:$0xff] }
   0x4   :  { %v2285_v9 = vld [vmem:[%s3751_s1 + $0x48] sm:$0xff]  ;;  %v2297_v11 = vld [vmem:[%s3751_s1 + $0x58] sm:$0xff]  ;;  %v2302_v12 = vld [vmem:[%s3751_s1 + $0x50] sm:$0xff] }
   0x6   :  { %109 = vperm.xlu1 %2072, %v2249_v3   ;;  %99 = vperm.xlu0 %2071, %v2254_v4  }
   0xa   :  { %119 = vperm.xlu1 %2072, %v2261_v5   ;;  %114 = vperm.xlu0 %2071, %v2266_v6  }
   0xe   :  { %129 = vperm.xlu1 %2072, %v2273_v7   ;;  %124 = vperm.xlu0 %2071, %v2278_v8  }
  0x12   :  { %139 = vperm.xlu1 %2072, %v2285_v9   ;;  %134 = vperm.xlu0 %2071, %v2290_v10  }
  0x13   :  { %12 = vsyncpa [#allocation3], 0  ;;  %v2309_v13 = vld [vmem:[%s3751_s1 + $0x68] sm:$0xff]  ;;  %v2314_v14 = vld [vmem:[%s3751_s1 + $0x60] sm:$0xff]  ;;  %vm2189_vm0 = vmmov 0   ;;  %s2191_s8 = smov [#allocation2]  }
  0x14   :  { %v2321_v15 = vld [vmem:[%s3751_s1 + $0x78] sm:$0xff]  ;;  %v2326_v16 = vld [vmem:[%s3751_s1 + $0x70] sm:$0xff]  ;;  %v2333_v17 = vld [vmem:[%s3751_s1 + $0x88] sm:$0xff]  ;;  %s1865_s9 = sshll.u32 %s2191_s8, 4  ;;  %s1866_s9 = int_to_ptr.vmem [resolvable:$true] %s1865_s9 }
  0x15   :  { %v2338_v18 = vld [vmem:[%s3751_s1 + $0x80] sm:$0xff]  ;;  %v2345_v19 = vld [vmem:[%s3751_s1 + $0x98] sm:$0xff]  ;;  %v2350_v20 = vld [vmem:[%s3751_s1 + $0x90] sm:$0xff]  ;;  %s2158_s10 = scalar_lea.vmem %s1866_s9, 128  ;;  %p2163_p1 = scmp.lt.s32.totalorder %s1866_s9, %s1866_s9 }
  0x16   :  { %149 = vperm.xlu1 %2072, %v2297_v11   ;;  %144 = vperm.xlu0 %2071, %v2302_v12   ;;  %v2357_v21 = vld [vmem:[%s3751_s1 + $0xa8] sm:$0xff]  ;;  %v2362_v22 = vld [vmem:[%s3751_s1 + $0xa0] sm:$0xff]  ;;  %v2369_v23 = vld [vmem:[%s3751_s1 + $0xb8] sm:$0xff]  ;;  %p2159_p0 = scmp.ne.s32.totalorder %s1866_s9, %s2158_s10  ;;  %p2164_p2 = scmp.lt.s32.totalorder %s2158_s10, %s2158_s10 }
  0x17   :  { %v2374_v24 = vld [vmem:[%s3751_s1 + $0xb0] sm:$0xff]  ;;  %v2381_v25 = vld [vmem:[%s3751_s1 + $0xc8] sm:$0xff]  ;;  %v2386_v26 = vld [vmem:[%s3751_s1 + $0xc0] sm:$0xff] }
  0x18   :  { %v2393_v27 = vld [vmem:[%s3751_s1 + $0xd8] sm:$0xff]  ;;  %v2398_v28 = vld [vmem:[%s3751_s1 + $0xd0] sm:$0xff]  ;;  %v2405_v29 = vld [vmem:[%s3751_s1 + $0xe8] sm:$0xff]  ;;  %p2165_p3 = por %p2164_p2, %p2163_p1 }
  0x19   :  { %v2410_v30 = vld [vmem:[%s3751_s1 + $0xe0] sm:$0xff]  ;;  %v2417_v31 = vld [vmem:[%s3751_s1 + $0xf8] sm:$0xff]  ;;  %v2422_v32 = vld [vmem:[%s3751_s1 + $0xf0] sm:$0xff] }
  0x1a   :  { %159 = vperm.xlu1 %2072, %v2309_v13   ;;  %154 = vperm.xlu0 %2071, %v2314_v14   ;;  %v61_v33 = vld [vmem:[%s3752_s2 + $0x8] sm:$0xff]  ;;  %v60_v34 = vld [vmem:[%s3752_s2] sm:$0xff]  ;;  %v63_v35 = vld [vmem:[%s3752_s2 + $0x18] sm:$0xff]  ;;  %p2166_p4 = pnand %p2165_p3, %p2159_p0 }
  0x1b   :  { %v62_v36 = vld [vmem:[%s3752_s2 + $0x10] sm:$0xff]  ;;  %v65_v37 = vld [vmem:[%s3752_s2 + $0x28] sm:$0xff]  ;;  %v64_v38 = vld [vmem:[%s3752_s2 + $0x20] sm:$0xff] }
  0x1c   :  { %v67_v39 = vld [vmem:[%s3752_s2 + $0x38] sm:$0xff]  ;;  %v66_v40 = vld [vmem:[%s3752_s2 + $0x30] sm:$0xff]  ;;  %v69_v41 = vld [vmem:[%s3752_s2 + $0x48] sm:$0xff] }
  0x1d   :  { %v68_v42 = vld [vmem:[%s3752_s2 + $0x40] sm:$0xff]  ;;  %v71_v43 = vld [vmem:[%s3752_s2 + $0x58] sm:$0xff]  ;;  %v70_v44 = vld [vmem:[%s3752_s2 + $0x50] sm:$0xff] }
  0x1e   :  { %169 = vperm.xlu1 %2072, %v2321_v15   ;;  %164 = vperm.xlu0 %2071, %v2326_v16   ;;  %v73_v45 = vld [vmem:[%s3752_s2 + $0x68] sm:$0xff]  ;;  %v72_v46 = vld [vmem:[%s3752_s2 + $0x60] sm:$0xff]  ;;  %v75_v47 = vld [vmem:[%s3752_s2 + $0x78] sm:$0xff] }
  0x1f   :  { %v74_v48 = vld [vmem:[%s3752_s2 + $0x70] sm:$0xff]  ;;  %v77_v49 = vld [vmem:[%s3752_s2 + $0x88] sm:$0xff]  ;;  %v76_v50 = vld [vmem:[%s3752_s2 + $0x80] sm:$0xff] }
  0x20   :  { %v79_v51 = vld [vmem:[%s3752_s2 + $0x98] sm:$0xff]  ;;  %v78_v52 = vld [vmem:[%s3752_s2 + $0x90] sm:$0xff]  ;;  %v81_v53 = vld [vmem:[%s3752_s2 + $0xa8] sm:$0xff] }
  0x21   :  { %v80_v54 = vld [vmem:[%s3752_s2 + $0xa0] sm:$0xff]  ;;  %v83_v55 = vld [vmem:[%s3752_s2 + $0xb8] sm:$0xff]  ;;  %v82_v56 = vld [vmem:[%s3752_s2 + $0xb0] sm:$0xff] }
  0x22   :  { %179 = vperm.xlu1 %2072, %v2333_v17   ;;  %174 = vperm.xlu0 %2071, %v2338_v18   ;;  %v85_v57 = vld [vmem:[%s3752_s2 + $0xc8] sm:$0xff]  ;;  %v84_v58 = vld [vmem:[%s3752_s2 + $0xc0] sm:$0xff]  ;;  %v87_v59 = vld [vmem:[%s3752_s2 + $0xd8] sm:$0xff] }
  0x23   :  { %v86_v60 = vld [vmem:[%s3752_s2 + $0xd0] sm:$0xff]  ;;  %v89_v61 = vld [vmem:[%s3752_s2 + $0xe8] sm:$0xff]  ;;  %v88_v62 = vld [vmem:[%s3752_s2 + $0xe0] sm:$0xff] }
  0x24   :  { %v91_v63 = vld [vmem:[%s3752_s2 + $0xf8] sm:$0xff] }
  0x26   :  { %189 = vperm.xlu1 %2072, %v2345_v19   ;;  %184 = vperm.xlu0 %2071, %v2350_v20  }
  0x2a   :  { %199 = vperm.xlu1 %2072, %v2357_v21   ;;  %194 = vperm.xlu0 %2071, %v2362_v22  }
  0x2e   :  { %209 = vperm.xlu1 %2072, %v2369_v23   ;;  %204 = vperm.xlu0 %2071, %v2374_v24  }
  0x32   :  { %219 = vperm.xlu1 %2072, %v2381_v25   ;;  %214 = vperm.xlu0 %2071, %v2386_v26  }
  0x36   :  { %229 = vperm.xlu1 %2072, %v2393_v27   ;;  %224 = vperm.xlu0 %2071, %v2398_v28  }
  0x3a   :  { %239 = vperm.xlu1 %2072, %v2405_v29   ;;  %234 = vperm.xlu0 %2071, %v2410_v30  }
  0x3e   :  { %249 = vperm.xlu1 %2072, %v2417_v31   ;;  %244 = vperm.xlu0 %2071, %v2422_v32  }
  0x42   :  { %295 = vperm.xlu1 %2072, %v61_v33   ;;  %290 = vperm.xlu0 %2071, %v60_v34   ;;  %v90_v33 = vld [vmem:[%s3752_s2 + $0xf0] sm:$0xff] }
  0x46   :  { %305 = vperm.xlu1 %2072, %v63_v35   ;;  %300 = vperm.xlu0 %2071, %v62_v36   ;;  %v3760_v36 = vmov 1  }
  0x4a   :  { %315 = vperm.xlu1 %2072, %v65_v37   ;;  %310 = vperm.xlu0 %2071, %v64_v38  }
  0x4e   :  { %325 = vperm.xlu1 %2072, %v67_v39   ;;  %320 = vperm.xlu0 %2071, %v66_v40  }
  0x52   :  { %335 = vperm.xlu1 %2072, %v69_v41   ;;  %330 = vperm.xlu0 %2071, %v68_v42  }
  0x56   :  { %345 = vperm.xlu1 %2072, %v71_v43   ;;  %340 = vperm.xlu0 %2071, %v70_v44  }
  0x5a   :  { %355 = vperm.xlu1 %2072, %v73_v45   ;;  %350 = vperm.xlu0 %2071, %v72_v46  }
  0x5e   :  { %365 = vperm.xlu1 %2072, %v75_v47   ;;  %360 = vperm.xlu0 %2071, %v74_v48  }
  0x62   :  { %375 = vperm.xlu1 %2072, %v77_v49   ;;  %370 = vperm.xlu0 %2071, %v76_v50  }
  0x66   :  { %385 = vperm.xlu1 %2072, %v79_v51   ;;  %380 = vperm.xlu0 %2071, %v78_v52  }
  0x6a   :  { %395 = vperm.xlu1 %2072, %v81_v53   ;;  %390 = vperm.xlu0 %2071, %v80_v54  }
  0x6e   :  { %405 = vperm.xlu1 %2072, %v83_v55   ;;  %400 = vperm.xlu0 %2071, %v82_v56  }
  0x72   :  { %415 = vperm.xlu1 %2072, %v85_v57   ;;  %410 = vperm.xlu0 %2071, %v84_v58  }
  0x76   :  { %425 = vperm.xlu1 %2072, %v87_v59   ;;  %420 = vperm.xlu0 %2071, %v86_v60  }
  0x7a   :  { %435 = vperm.xlu1 %2072, %v89_v61   ;;  %430 = vperm.xlu0 %2071, %v88_v62   ;;  %v3762_v62 = vmov 2  }
  0x7e   :  { %445 = vperm.xlu1 %2072, %v91_v63   ;;  %440 = vperm.xlu0 %2071, %v90_v33  }
  0x81   :  { %v2522_v34 = vpop.permute.xlu1 %104  ;;  %v2524_v35 = vpop.permute.xlu0 %94 }
  0x82   :  { %2074 = vset.pattern.permute.xlu1 %v3760_v36  ;;  %2073 = vset.pattern.permute.xlu0 %v3760_v36 }
  0x83   :  { %485 = vperm.xlu1 %2074, %v2254_v4   ;;  %481 = vperm.xlu0 %2073, %v2240_v1  }
  0x85   :  { %v2530_v37 = vpop.permute.xlu1 %109  ;;  %v2532_v38 = vpop.permute.xlu0 %99 }
  0x87   :  { %489 = vperm.xlu1 %2074, %v2235_v0   ;;  %493 = vperm.xlu0 %2073, %v2249_v3  }
  0x89   :  { %v2536_v39 = vpop.permute.xlu1 %119  ;;  %v2538_v40 = vpop.permute.xlu0 %114 }
  0x8b   :  { %497 = vperm.xlu1 %2074, %v2266_v6   ;;  %501 = vperm.xlu0 %2073, %v2261_v5  }
  0x8d   :  { %v2542_v41 = vpop.permute.xlu1 %129  ;;  %v2544_v42 = vpop.permute.xlu0 %124 }
  0x8f   :  { %505 = vperm.xlu1 %2074, %v2278_v8   ;;  %509 = vperm.xlu0 %2073, %v2273_v7  }
  0x91   :  { %v2548_v43 = vpop.permute.xlu1 %139  ;;  %v2550_v44 = vpop.permute.xlu0 %134 }
  0x92   :  { %3777 = vst [vmem:[#allocation5_spill] sm:$0xff] %v2548_v43  ;;  %3778 = vst [vmem:[#allocation6_spill] sm:$0xff] %v2550_v44 }
  0x93   :  { %513 = vperm.xlu1 %2074, %v2290_v10   ;;  %517 = vperm.xlu0 %2073, %v2285_v9  }
  0x95   :  { %v2554_v45 = vpop.permute.xlu1 %149  ;;  %v2556_v46 = vpop.permute.xlu0 %144 }
  0x96   :  { %3779 = vst [vmem:[#allocation7_spill] sm:$0xff] %v2554_v45 }
  0x97   :  { %521 = vperm.xlu1 %2074, %v2302_v12   ;;  %525 = vperm.xlu0 %2073, %v2297_v11  }
  0x99   :  { %v2560_v47 = vpop.permute.xlu1 %159  ;;  %v2562_v48 = vpop.permute.xlu0 %154 }
  0x9a   :  { %3780 = vst [vmem:[#allocation8_spill] sm:$0xff] %v2560_v47  ;;  %3781 = vst [vmem:[#allocation9_spill] sm:$0xff] %v2562_v48  ;;  %v3794_v48 = vmov 2  }
  0x9b   :  { %529 = vperm.xlu1 %2074, %v2314_v14   ;;  %533 = vperm.xlu0 %2073, %v2309_v13  }
  0x9d   :  { %v2566_v49 = vpop.permute.xlu1 %169  ;;  %v2568_v50 = vpop.permute.xlu0 %164 }
  0x9e   :  { %3782 = vst [vmem:[#allocation10_spill] sm:$0xff] %v2566_v49  ;;  %v3764_v49 = vmov 3  }
  0x9f   :  { %537 = vperm.xlu1 %2074, %v2326_v16   ;;  %541 = vperm.xlu0 %2073, %v2321_v15  }
  0xa1   :  { %v2572_v51 = vpop.permute.xlu1 %179  ;;  %v2574_v52 = vpop.permute.xlu0 %174 }
  0xa3   :  { %545 = vperm.xlu1 %2074, %v2338_v18   ;;  %549 = vperm.xlu0 %2073, %v2333_v17  }
  0xa5   :  { %v2578_v53 = vpop.permute.xlu1 %189  ;;  %v2580_v54 = vpop.permute.xlu0 %184 }
  0xa7   :  { %553 = vperm.xlu1 %2074, %v2350_v20   ;;  %557 = vperm.xlu0 %2073, %v2345_v19  }
  0xa9   :  { %v2584_v13 = vpop.permute.xlu1 %199  ;;  %v2586_v55 = vpop.permute.xlu0 %194 }
  0xab   :  { %561 = vperm.xlu1 %2074, %v2362_v22   ;;  %565 = vperm.xlu0 %2073, %v2357_v21  }
  0xad   :  { %v2590_v56 = vpop.permute.xlu1 %209  ;;  %v2592_v57 = vpop.permute.xlu0 %204 }
  0xae   :  { %3783 = vst [vmem:[#allocation11_spill] sm:$0xff] %v2590_v56  ;;  %3784 = vst [vmem:[#allocation12_spill] sm:$0xff] %v2592_v57  ;;  %v3766_v56 = vmov 4  }
  0xaf   :  { %569 = vperm.xlu1 %2074, %v2374_v24   ;;  %573 = vperm.xlu0 %2073, %v2369_v23  }
  0xb1   :  { %v2596_v58 = vpop.permute.xlu1 %219  ;;  %v2598_v59 = vpop.permute.xlu0 %214 }
  0xb2   :  { %3785 = vst [vmem:[#allocation13_spill] sm:$0xff] %v2596_v58 }
  0xb3   :  { %577 = vperm.xlu1 %2074, %v2386_v26   ;;  %581 = vperm.xlu0 %2073, %v2381_v25  }
  0xb5   :  { %v2602_v60 = vpop.permute.xlu1 %229  ;;  %v2604_v61 = vpop.permute.xlu0 %224 }
  0xb6   :  { %3786 = vst [vmem:[#allocation14_spill] sm:$0xff] %v2602_v60  ;;  %3787 = vst [vmem:[#allocation15_spill] sm:$0xff] %v2604_v61 }
  0xb7   :  { %2075 = vset.pattern.permute.xlu1 %v3762_v62  ;;  %585 = vperm.xlu0 %2073, %v2398_v28  }
  0xb8   :  { %745 = vperm.xlu1 %2075, %v2333_v17  }
  0xb9   :  { %v2609_v63 = vpop.permute.xlu1 %239  ;;  %v2611_v33 = vpop.permute.xlu0 %234 }
  0xba   :  { %3788 = vst [vmem:[#allocation16_spill] sm:$0xff] %v2609_v63  ;;  %3789 = vst [vmem:[#allocation17_spill] sm:$0xff] %v2611_v33 }
  0xbb   :  { %597 = vperm.xlu0 %2073, %v2405_v29  }
  0xbc   :  { %677 = vperm.xlu1 %2075, %v2240_v1  }
  0xbd   :  { %v2615_v2 = vpop.permute.xlu1 %249  ;;  %v2617_v36 = vpop.permute.xlu0 %244 }
  0xbe   :  { %3790 = vst [vmem:[#allocation18_spill] sm:$0xff] %v2615_v2  ;;  %3791 = vst [vmem:[#allocation19_spill] sm:$0xff] %v2617_v36 }
  0xbf   :  { %601 = vperm.xlu0 %2073, %v2422_v32  }
  0xc0   :  { %2076 = vset.pattern.permute.xlu1 %v3764_v49 }
  0xc1   :  { %v2621_v62 = vpop.permute.xlu1 %295  ;;  %937 = vperm.xlu1 %2076, %v2338_v18   ;;  %v2624_v47 = vpop.permute.xlu0 %290 }
  0xc2   :  { %3792 = vst [vmem:[#allocation20_spill] sm:$0xff] %v2621_v62  ;;  %3793 = vst [vmem:[#allocation21_spill] sm:$0xff] %v2624_v47 }
  0xc3   :  { %2123 = vset.pattern.permute.xlu0 %v3794_v48 }
  0xc4   :  { %741 = vperm.xlu0 %2123, %v2338_v18  }
  0xc5   :  { %v2628_v63 = vpop.permute.xlu1 %305  ;;  %873 = vperm.xlu1 %2076, %v2240_v1   ;;  %v2631_v36 = vpop.permute.xlu0 %300 }
  0xc6   :  { %3795 = vst [vmem:[#allocation22_spill] sm:$0xff] %v2628_v63  ;;  %3796 = vst [vmem:[#allocation23_spill] sm:$0xff] %v2631_v36 }
  0xc8   :  { %681 = vperm.xlu0 %2123, %v2254_v4  }
  0xc9   :  { %v2634_v2 = vpop.permute.xlu1 %315  ;;  %877 = vperm.xlu1 %2076, %v2254_v4   ;;  %v2637_v49 = vpop.permute.xlu0 %310 }
  0xca   :  { %3797 = vst [vmem:[#allocation24_spill] sm:$0xff] %v2634_v2  ;;  %3798 = vst [vmem:[#allocation25_spill] sm:$0xff] %v2637_v49 }
  0xcc   :  { %749 = vperm.xlu0 %2123, %v2350_v20  }
  0xcd   :  { %v2640_v43 = vpop.permute.xlu1 %325  ;;  %2077 = vset.pattern.permute.xlu1 %v3794_v48  ;;  %v2643_v33 = vpop.permute.xlu0 %320 }
  0xce   :  { %3799 = vst [vmem:[#allocation26_spill] sm:$0xff] %v2643_v33  ;;  %753 = vperm.xlu1 %2077, %v2345_v19  }
  0xd0   :  { %757 = vperm.xlu0 %2123, %v2362_v22  }
  0xd1   :  { %v2647_v45 = vpop.permute.xlu1 %335  ;;  %v2649_v61 = vpop.permute.xlu0 %330 }
  0xd2   :  { %3800 = vst [vmem:[#allocation27_spill] sm:$0xff] %v2647_v45  ;;  %3801 = vst [vmem:[#allocation28_spill] sm:$0xff] %v2649_v61  ;;  %2078 = vset.pattern.permute.xlu1 %v3766_v56 }
  0xd3   :  { %1133 = vperm.xlu1 %2078, %v2338_v18  }
  0xd4   :  { %765 = vperm.xlu0 %2123, %v2374_v24  }
  0xd5   :  { %v2654_v60 = vpop.permute.xlu1 %345  ;;  %v2656_v57 = vpop.permute.xlu0 %340 }
  0xd6   :  { %3802 = vst [vmem:[#allocation29_spill] sm:$0xff] %v2654_v60  ;;  %v3806_v60 = vmov 4  }
  0xd7   :  { %2079 = vset.pattern.permute.xlu1 %v3794_v48 }
  0xd8   :  { %685 = vperm.xlu1 %2079, %v2235_v0   ;;  %773 = vperm.xlu0 %2123, %v2386_v26  }
  0xd9   :  { %v2661_v45 = vpop.permute.xlu1 %355  ;;  %v2663_v61 = vpop.permute.xlu0 %350 }
  0xda   :  { %3803 = vst [vmem:[#allocation30_spill] sm:$0xff] %v2661_v45  ;;  %3804 = vst [vmem:[#allocation31_spill] sm:$0xff] %v2663_v61  ;;  %v3810_v61 = vmov 3  }
  0xdc   :  { %689 = vperm.xlu1 %2079, %v2249_v3   ;;  %785 = vperm.xlu0 %2123, %v2393_v27  }
  0xdd   :  { %v2667_v56 = vpop.permute.xlu1 %365  ;;  %v2669_v44 = vpop.permute.xlu0 %360 }
  0xde   :  { %3805 = vst [vmem:[#allocation32_spill] sm:$0xff] %v2667_v56 }
  0xe0   :  { %2080 = vset.pattern.permute.xlu1 %v3806_v60  ;;  %717 = vperm.xlu0 %2123, %v2302_v12  }
  0xe1   :  { %v2673_v33 = vpop.permute.xlu1 %375  ;;  %1073 = vperm.xlu1 %2080, %v2254_v4   ;;  %v2676_v49 = vpop.permute.xlu0 %370 }
  0xe2   :  { %3807 = vst [vmem:[#allocation33_spill] sm:$0xff] %v2673_v33  ;;  %3808 = vst [vmem:[#allocation34_spill] sm:$0xff] %v2676_v49  ;;  %v3768_v33 = vmov 5  }
  0xe4   :  { %789 = vperm.xlu0 %2123, %v2410_v30  }
  0xe5   :  { %v2679_v45 = vpop.permute.xlu1 %385  ;;  %2081 = vset.pattern.permute.xlu1 %v3810_v61  ;;  %v2682_v2 = vpop.permute.xlu0 %380 }
  0xe6   :  { %3809 = vst [vmem:[#allocation35_spill] sm:$0xff] %v2679_v45  ;;  %3811 = vst [vmem:[#allocation36_spill] sm:$0xff] %v2682_v2  ;;  %949 = vperm.xlu1 %2081, %v2345_v19  }
  0xe8   :  { %801 = vperm.xlu0 %2123, %v2417_v31  }
  0xe9   :  { %v2686_v56 = vpop.permute.xlu1 %395  ;;  %v2688_v36 = vpop.permute.xlu0 %390 }
  0xea   :  { %3812 = vst [vmem:[#allocation37_spill] sm:$0xff] %v2686_v56  ;;  %3813 = vst [vmem:[#allocation38_spill] sm:$0xff] %v2688_v36  ;;  %2082 = vset.pattern.permute.xlu1 %v3768_v33 }
  0xeb   :  { %1329 = vperm.xlu1 %2082, %v2338_v18  }
  0xec   :  { %733 = vperm.xlu0 %2123, %v2326_v16  }
  0xed   :  { %v2693_v45 = vpop.permute.xlu1 %405  ;;  %v2695_v49 = vpop.permute.xlu0 %400 }
  0xee   :  { %3814 = vst [vmem:[#allocation39_spill] sm:$0xff] %v2693_v45  ;;  %3815 = vst [vmem:[#allocation40_spill] sm:$0xff] %v2695_v49  ;;  %v3819_v45 = vmov 5  }
  0xef   :  { %2083 = vset.pattern.permute.xlu1 %v3810_v61 }
  0xf0   :  { %881 = vperm.xlu1 %2083, %v2235_v0   ;;  %2131 = vset.pattern.permute.xlu0 %v3810_v61 }
  0xf1   :  { %v2700_v56 = vpop.permute.xlu1 %415  ;;  %941 = vperm.xlu0 %2131, %v2333_v17   ;;  %v2703_v36 = vpop.permute.xlu0 %410 }
  0xf2   :  { %3816 = vst [vmem:[#allocation41_spill] sm:$0xff] %v2700_v56 }
  0xf4   :  { %885 = vperm.xlu1 %2083, %v2249_v3  }
  0xf5   :  { %v2706_v18 = vpop.permute.xlu1 %425  ;;  %945 = vperm.xlu0 %2131, %v2350_v20   ;;  %v2709_v33 = vpop.permute.xlu0 %420 }
  0xf6   :  { %3817 = vst [vmem:[#allocation42_spill] sm:$0xff] %v2706_v18  ;;  %3818 = vst [vmem:[#allocation43_spill] sm:$0xff] %v2709_v33 }
  0xf8   :  { %2084 = vset.pattern.permute.xlu1 %v3819_v45 }
  0xf9   :  { %v2712_v49 = vpop.permute.xlu1 %435  ;;  %1269 = vperm.xlu1 %2084, %v2254_v4   ;;  %953 = vperm.xlu0 %2131, %v2362_v22   ;;  %v2716_v56 = vpop.permute.xlu0 %430 }
  0xfa   :  { %3820 = vst [vmem:[#allocation44_spill] sm:$0xff] %v2712_v49  ;;  %3821 = vst [vmem:[#allocation45_spill] sm:$0xff] %v2716_v56 }
  0xfd   :  { %v2718_v2 = vpop.permute.xlu1 %445  ;;  %2085 = vset.pattern.permute.xlu1 %v3794_v48  ;;  %901 = vperm.xlu0 %2131, %v2273_v7   ;;  %v2722_v18 = vpop.permute.xlu0 %440 }
  0xfe   :  { %3822 = vst [vmem:[#allocation46_spill] sm:$0xff] %v2718_v2  ;;  %3823 = vst [vmem:[#allocation47_spill] sm:$0xff] %v2722_v18  ;;  %761 = vperm.xlu1 %2085, %v2357_v21  }
 0x101   :  { %973 = vperm.xlu0 %2131, %v2381_v25  }
 0x102   :  { %v2726_v33 = vpop.permute.xlu1 %485  ;;  %2086 = vset.pattern.permute.xlu1 %v3806_v60  ;;  %v2729_v4 = vpop.permute.xlu0 %481 }
 0x103   :  { %3824 = vst [vmem:[#allocation48_spill] sm:$0xff] %v2726_v33  ;;  %3825 = vst [vmem:[#allocation49_spill] sm:$0xff] %v2729_v4  ;;  %1141 = vperm.xlu1 %2086, %v2350_v20  }
 0x105   :  { %905 = vperm.xlu0 %2131, %v2290_v10  }
 0x106   :  { %v2733_v2 = vpop.permute.xlu1 %489  ;;  %v2735_v49 = vpop.permute.xlu0 %493 }
 0x107   :  { %3826 = vst [vmem:[#allocation50_spill] sm:$0xff] %v2733_v2  ;;  %3827 = vst [vmem:[#allocation51_spill] sm:$0xff] %v2735_v49  ;;  %2087 = vset.pattern.permute.xlu1 %v3794_v48 }
 0x108   :  { %693 = vperm.xlu1 %2087, %v2266_v6  }
 0x109   :  { %917 = vperm.xlu0 %2131, %v2297_v11  }
 0x10a   :  { %v2740_v18 = vpop.permute.xlu1 %497  ;;  %v2742_v56 = vpop.permute.xlu0 %501 }
 0x10b   :  { %3828 = vst [vmem:[#allocation52_spill] sm:$0xff] %v2740_v18  ;;  %3829 = vst [vmem:[#allocation53_spill] sm:$0xff] %v2742_v56 }
 0x10c   :  { %697 = vperm.xlu1 %2087, %v2261_v5  }
 0x10d   :  { %989 = vperm.xlu0 %2131, %v2405_v29  }
 0x10e   :  { %v2746_v4 = vpop.permute.xlu1 %505  ;;  %v2748_v33 = vpop.permute.xlu0 %509 }
 0x10f   :  { %3830 = vst [vmem:[#allocation54_spill] sm:$0xff] %v2746_v4 }
 0x110   :  { %2088 = vset.pattern.permute.xlu1 %v3806_v60 }
 0x111   :  { %1081 = vperm.xlu1 %2088, %v2249_v3   ;;  %921 = vperm.xlu0 %2131, %v2314_v14  }
 0x112   :  { %v2753_v49 = vpop.permute.xlu1 %513  ;;  %v2755_v2 = vpop.permute.xlu0 %517 }
 0x113   :  { %3831 = vst [vmem:[#allocation55_spill] sm:$0xff] %v2753_v49  ;;  %3832 = vst [vmem:[#allocation56_spill] sm:$0xff] %v2755_v2 }
 0x115   :  { %2089 = vset.pattern.permute.xlu1 %v3810_v61  ;;  %997 = vperm.xlu0 %2131, %v2417_v31  }
 0x116   :  { %v2759_v56 = vpop.permute.xlu1 %521  ;;  %957 = vperm.xlu1 %2089, %v2357_v21   ;;  %v2762_v29 = vpop.permute.xlu0 %525 }
 0x117   :  { %3833 = vst [vmem:[#allocation57_spill] sm:$0xff] %v2762_v29 }
 0x119   :  { %929 = vperm.xlu0 %2131, %v2326_v16  }
 0x11a   :  { %v2765_v4 = vpop.permute.xlu1 %529  ;;  %2090 = vset.pattern.permute.xlu1 %v3819_v45  ;;  %v2768_v18 = vpop.permute.xlu0 %533 }
 0x11b   :  { %3834 = vst [vmem:[#allocation58_spill] sm:$0xff] %v2765_v4  ;;  %3835 = vst [vmem:[#allocation59_spill] sm:$0xff] %v2768_v18  ;;  %1337 = vperm.xlu1 %2090, %v2350_v20  }
 0x11d   :  { %2136 = vset.pattern.permute.xlu0 %v3806_v60 }
 0x11e   :  { %v2772_v2 = vpop.permute.xlu1 %537  ;;  %1137 = vperm.xlu0 %2136, %v2333_v17   ;;  %v2775_v49 = vpop.permute.xlu0 %541 }
 0x11f   :  { %3836 = vst [vmem:[#allocation60_spill] sm:$0xff] %v2775_v49  ;;  %2091 = vset.pattern.permute.xlu1 %v3810_v61 }
 0x120   :  { %889 = vperm.xlu1 %2091, %v2266_v6  }
 0x122   :  { %v2779_v16 = vpop.permute.xlu1 %545  ;;  %1069 = vperm.xlu0 %2136, %v2240_v1   ;;  %v2782_v4 = vpop.permute.xlu0 %549 }
 0x123   :  { %3837 = vst [vmem:[#allocation61_spill] sm:$0xff] %v2779_v16  ;;  %3838 = vst [vmem:[#allocation62_spill] sm:$0xff] %v2782_v4 }
 0x124   :  { %893 = vperm.xlu1 %2091, %v2261_v5  }
 0x126   :  { %v2785_v20 = vpop.permute.xlu1 %553  ;;  %1145 = vperm.xlu0 %2136, %v2345_v19   ;;  %v2788_v18 = vpop.permute.xlu0 %557 }
 0x127   :  { %3839 = vst [vmem:[#allocation63_spill] sm:$0xff] %v2785_v20  ;;  %3840 = vst [vmem:[#allocation64_spill] sm:$0xff] %v2788_v18 }
 0x128   :  { %2092 = vset.pattern.permute.xlu1 %v3819_v45 }
 0x129   :  { %1277 = vperm.xlu1 %2092, %v2249_v3  }
 0x12a   :  { %v2792_v49 = vpop.permute.xlu1 %561  ;;  %1077 = vperm.xlu0 %2136, %v2235_v0   ;;  %v2795_v29 = vpop.permute.xlu0 %565 }
 0x12b   :  { %3841 = vst [vmem:[#allocation65_spill] sm:$0xff] %v2792_v49  ;;  %3842 = vst [vmem:[#allocation66_spill] sm:$0xff] %v2795_v29 }
 0x12d   :  { %2093 = vset.pattern.permute.xlu1 %v3794_v48 }
 0x12e   :  { %v2798_v4 = vpop.permute.xlu1 %569  ;;  %769 = vperm.xlu1 %2093, %v2369_v23   ;;  %1153 = vperm.xlu0 %2136, %v2357_v21   ;;  %v2802_v20 = vpop.permute.xlu0 %573 }
 0x12f   :  { %3843 = vst [vmem:[#allocation67_spill] sm:$0xff] %v2798_v4  ;;  %3844 = vst [vmem:[#allocation68_spill] sm:$0xff] %v2802_v20 }
 0x132   :  { %v578_v18 = vpop.permute.xlu1 %577  ;;  %2094 = vset.pattern.permute.xlu1 %v3806_v60  ;;  %1085 = vperm.xlu0 %2136, %v2266_v6   ;;  %v2806_v3 = vpop.permute.xlu0 %581 }
 0x133   :  { %3845 = vst [vmem:[#allocation69_spill] sm:$0xff] %v2806_v3  ;;  %1149 = vperm.xlu1 %2094, %v2362_v22  }
 0x136   :  { %1161 = vperm.xlu0 %2136, %v2369_v23   ;;  %v2810_v29 = vpop.permute.xlu0 %585 }
 0x137   :  { %3846 = vst [vmem:[#allocation70_spill] sm:$0xff] %v2810_v29  ;;  %v2812_v4 = vpop.permute.xlu1 %745  ;;  %2095 = vset.pattern.permute.xlu1 %v3794_v48 }
 0x138   :  { %3847 = vst [vmem:[#allocation71_spill] sm:$0xff] %v2812_v4  ;;  %701 = vperm.xlu1 %2095, %v2278_v8   ;;  %v252_v4 = vlaneseq }
 0x13a   :  { %1093 = vperm.xlu0 %2136, %v2278_v8   ;;  %v2817_v20 = vpop.permute.xlu0 %597 }
 0x13b   :  { %3848 = vst [vmem:[#allocation72_spill] sm:$0xff] %v2817_v20  ;;  %v2819_v49 = vpop.permute.xlu1 %677 }
 0x13c   :  { %3849 = vst [vmem:[#allocation73_spill] sm:$0xff] %v2819_v49  ;;  %705 = vperm.xlu1 %2095, %v2273_v7   ;;  %v2835_v49 = vshrl.u32 %v252_v4, 7 }
 0x13e   :  { %1101 = vperm.xlu0 %2136, %v2290_v10   ;;  %v2823_v3 = vpop.permute.xlu0 %601  ;;  %v254_v63 = vsub.s32 0, %v2835_v49 }
 0x13f   :  { %3850 = vst [vmem:[#allocation74_spill] sm:$0xff] %v2823_v3 }
 0x140   :  { %2096 = vset.pattern.permute.xlu1 %v3806_v60  ;;  %v2826_v29 = vpop.permute.xlu1 %937 }
 0x141   :  { %3851 = vst [vmem:[#allocation75_spill] sm:$0xff] %v2826_v29  ;;  %1089 = vperm.xlu1 %2096, %v2261_v5  }
 0x142   :  { %1177 = vperm.xlu0 %2136, %v2393_v27  }
 0x143   :  { %v2830_v16 = vpop.permute.xlu0 %741 }
 0x144   :  { %3852 = vst [vmem:[#allocation76_spill] sm:$0xff] %v2830_v16  ;;  %v2832_v20 = vpop.permute.xlu1 %873 }
 0x145   :  { %3853 = vst [vmem:[#allocation77_spill] sm:$0xff] %v2832_v20  ;;  %2097 = vset.pattern.permute.xlu1 %v3810_v61  ;;  %v2849_v20 = vld [vmem:[%s3750_s0] sm:$0x3f] }
 0x146   :  { %961 = vperm.xlu1 %2097, %v2374_v24   ;;  %1109 = vperm.xlu0 %2136, %v2302_v12   ;;  %v2856_v47 = vrot.slane %v2849_v20, %v254_v63 }
 0x147   :  { %v2839_v3 = vpop.permute.xlu0 %681 }
 0x148   :  { %3854 = vst [vmem:[#allocation78_spill] sm:$0xff] %v2839_v3  ;;  %v2841_v29 = vpop.permute.xlu1 %877  ;;  %3858 = vst [vmem:[#allocation82_spill] sm:$0xff] %v2856_v47  ;;  %v280_v62 = vmul.f32 %v2856_v47, %v2598_v59  ;;  %v266_v58 = vmul.f32 %v2856_v47, %v2556_v46 }
 0x149   :  { %3855 = vst [vmem:[#allocation79_spill] sm:$0xff] %v2841_v29  ;;  %v610_v29 = vsub.s32 1, %v2835_v49 }
 0x14a   :  { %965 = vperm.xlu1 %2097, %v2369_v23   ;;  %1117 = vperm.xlu0 %2136, %v2314_v14  }
 0x14b   :  { %v2851_v4 = vpop.permute.xlu0 %749 }
 0x14c   :  { %3856 = vst [vmem:[#allocation80_spill] sm:$0xff] %v2851_v4  ;;  %v2867_v4 = vrot.slane %v2849_v20, %v610_v29 }
 0x14d   :  { %v2853_v16 = vpop.permute.xlu1 %753 }
 0x14e   :  { %3857 = vst [vmem:[#allocation81_spill] sm:$0xff] %v2853_v16  ;;  %2098 = vset.pattern.permute.xlu1 %v3819_v45  ;;  %1193 = vperm.xlu0 %2136, %v2417_v31   ;;  %3860 = vst [vmem:[#allocation84_spill] sm:$0xff] %v2867_v4  ;;  %v806_v16 = vsub.s32 2, %v2835_v49  ;;  %v622_v46 = vmul.f32 %v2867_v4, %v2759_v56 }
 0x14f   :  { %1349 = vperm.xlu1 %2098, %v2357_v21   ;;  %v2862_v3 = vpop.permute.xlu0 %757  ;;  %v472_v21 = vadd.f32 %v2703_v36, %v280_v62 }
 0x150   :  { %3859 = vst [vmem:[#allocation83_spill] sm:$0xff] %v2862_v3  ;;  %v636_v3 = vmul.f32 %v2867_v4, %v578_v18  ;;  %v2881_v59 = vrot.slane %v2849_v20, %v806_v16 }
 0x152   :  { %v2870_v63 = vpop.permute.xlu1 %1133  ;;  %2140 = vset.pattern.permute.xlu0 %v3819_v45 }
 0x153   :  { %3861 = vst [vmem:[#allocation85_spill] sm:$0xff] %v2870_v63  ;;  %2099 = vset.pattern.permute.xlu1 %v3810_v61  ;;  %1333 = vperm.xlu0 %2140, %v2333_v17   ;;  %v2875_v31 = vpop.permute.xlu0 %765  ;;  %v668_v17 = vadd.f32 %v636_v3, %v472_v21 }
 0x154   :  { %3862 = vst [vmem:[#allocation86_spill] sm:$0xff] %v2875_v31  ;;  %897 = vperm.xlu1 %2099, %v2278_v8  }
 0x157   :  { %v2883_v29 = vpop.permute.xlu1 %685  ;;  %1265 = vperm.xlu0 %2140, %v2240_v1   ;;  %v774_v63 = vpop.permute.xlu0 %773  ;;  %v458_v1 = vadd.f32 %v2656_v57, %v266_v58 }
 0x158   :  { %v832_v31 = vmul.f32 %v2881_v59, %v774_v63  ;;  %2100 = vset.pattern.permute.xlu1 %v3819_v45 }
 0x159   :  { %1281 = vperm.xlu1 %2100, %v2266_v6   ;;  %v654_v3 = vadd.f32 %v622_v46, %v458_v1 }
 0x15a   :  { %v2891_v36 = vadd.f32 %v832_v31, %v668_v17 }
 0x15b   :  { %v2893_v62 = vpop.permute.xlu1 %689  ;;  %1341 = vperm.xlu0 %2140, %v2345_v19   ;;  %v2896_v18 = vpop.permute.xlu0 %785 }
 0x15c   :  { %3863 = vst [vmem:[#allocation87_spill] sm:$0xff] %v2891_v36  ;;  %3864 = vst [vmem:[#allocation88_spill] sm:$0xff] %v2896_v18 }
 0x15d   :  { %1285 = vperm.xlu1 %2100, %v2261_v5   ;;  %v270_v5 = vmul.f32 %v2856_v47, %v2568_v50 }
 0x15f   :  { %1273 = vperm.xlu0 %2140, %v2235_v0   ;;  %v718_v16 = vpop.permute.xlu0 %717  ;;  %v462_v58 = vadd.f32 %v2669_v44, %v270_v5 }
 0x160   :  { %v818_v6 = vmul.f32 %v2881_v59, %v718_v16  ;;  %v2904_v63 = vpop.permute.xlu1 %1073 }
 0x161   :  { %2101 = vset.pattern.permute.xlu1 %v3794_v48 }
 0x162   :  { %v2907_v19 = vadd.f32 %v818_v6, %v654_v3  ;;  %777 = vperm.xlu1 %2101, %v2381_v25   ;;  %v3869_v6 = vmov 0  }
 0x163   :  { %1345 = vperm.xlu0 %2140, %v2362_v22   ;;  %v2911_v57 = vpop.permute.xlu0 %789  ;;  %v626_v22 = vmul.f32 %v2867_v4, %v2772_v2 }
 0x164   :  { %3865 = vst [vmem:[#allocation89_spill] sm:$0xff] %v2907_v19  ;;  %3866 = vst [vmem:[#allocation90_spill] sm:$0xff] %v2911_v57 }
 0x165   :  { %v2915_v0 = vpop.permute.xlu1 %949  ;;  %v658_v21 = vadd.f32 %v626_v22, %v462_v58 }
 0x166   :  { %2102 = vset.pattern.permute.xlu1 %v3806_v60 }
 0x167   :  { %1157 = vperm.xlu1 %2102, %v2374_v24   ;;  %1289 = vperm.xlu0 %2140, %v2278_v8   ;;  %v2920_v56 = vpop.permute.xlu0 %801 }
 0x168   :  { %3867 = vst [vmem:[#allocation91_spill] sm:$0xff] %v2920_v56 }
 0x16a   :  { %v2925_v31 = vpop.permute.xlu1 %1329 }
 0x16b   :  { %2103 = vset.pattern.permute.xlu1 %v3794_v48  ;;  %v734_v50 = vpop.permute.xlu0 %733  ;;  %1361 = vperm.xlu0 %2140, %v2386_v26  }
 0x16c   :  { %v822_v17 = vmul.f32 %v2881_v59, %v734_v50  ;;  %709 = vperm.xlu1 %2103, %v2290_v10  }
 0x16e   :  { %v854_v8 = vadd.f32 %v822_v17, %v658_v21 }
 0x16f   :  { %v2931_v1 = vpop.permute.xlu1 %881  ;;  %1305 = vperm.xlu0 %2140, %v2302_v12   ;;  %v3868_v12 = vmov 1  }
 0x170   :  { %713 = vperm.xlu1 %2103, %v2285_v9   ;;  %v2935_v2 = vpop.permute.xlu0 %941 }
 0x173   :  { %v2937_v44 = vpop.permute.xlu1 %885  ;;  %1313 = vperm.xlu0 %2140, %v2314_v14  }
 0x174   :  { %2104 = vset.pattern.permute.xlu1 %v3806_v60  ;;  %v2941_v46 = vpop.permute.xlu0 %945 }
 0x175   :  { %1097 = vperm.xlu1 %2104, %v2273_v7  }
 0x177   :  { %1385 = vperm.xlu0 %2140, %v2422_v32  }
 0x178   :  { %v2945_v10 = vpop.permute.xlu1 %1269  ;;  %v2947_v16 = vpop.permute.xlu0 %953 }
 0x179   :  { %2105 = vset.pattern.permute.xlu1 %v3868_v12 }
 0x17a   :  { %589 = vperm.xlu1 %2105, %v2393_v27  }
 0x17b   :  { %1325 = vperm.xlu0 %2140, %v2321_v15  }
 0x17c   :  { %v2952_v3 = vpop.permute.xlu0 %901 }
 0x17d   :  { %v2954_v14 = vpop.permute.xlu1 %761 }
 0x17e   :  { %2106 = vset.pattern.permute.xlu1 %v3810_v61 }
 0x17f   :  { %969 = vperm.xlu1 %2106, %v2386_v26   ;;  %2143 = vset.pattern.permute.xlu0 %v3869_v6 }
 0x180   :  { %v2959_v32 = vpop.permute.xlu0 %973 }
 0x181   :  { %3870 = vst [vmem:[#allocation92_spill] sm:$0xff] %v2959_v32  ;;  %v261_v32 = vmul.f32 %v2856_v47, %v2536_v39  ;;  %v272_v39 = vmul.f32 %v2856_v47, %v2574_v52 }
 0x182   :  { %v2961_v5 = vpop.permute.xlu1 %1141 }
 0x183   :  { %2107 = vset.pattern.permute.xlu1 %v3819_v45 }
 0x184   :  { %1353 = vperm.xlu1 %2107, %v2374_v24   ;;  %v2965_v58 = vpop.permute.xlu0 %905 }
 0x185   :  { %3871 = vst [vmem:[#allocation93_spill] sm:$0xff] %v2965_v58 }
 0x187   :  { %v2967_v15 = vpop.permute.xlu1 %693 }
 0x188   :  { %1357 = vperm.xlu1 %2107, %v2369_v23   ;;  %v2970_v22 = vpop.permute.xlu0 %917  ;;  %v1002_v23 = vsub.s32 3, %v2835_v49 }
 0x189   :  { %3872 = vst [vmem:[#allocation94_spill] sm:$0xff] %v2970_v22 }
 0x18b   :  { %v2972_v50 = vpop.permute.xlu1 %697 }
 0x18c   :  { %2108 = vset.pattern.permute.xlu1 %v3810_v61  ;;  %v2975_v21 = vpop.permute.xlu0 %989 }
 0x18d   :  { %3873 = vst [vmem:[#allocation95_spill] sm:$0xff] %v2975_v21  ;;  %909 = vperm.xlu1 %2108, %v2285_v9   ;;  %v2991_v21 = vrot.slane %v2849_v20, %v1002_v23 }
 0x190   :  { %v2978_v17 = vpop.permute.xlu1 %1081  ;;  %v2980_v56 = vpop.permute.xlu0 %921 }
 0x191   :  { %3874 = vst [vmem:[#allocation96_spill] sm:$0xff] %v2978_v17  ;;  %3875 = vst [vmem:[#allocation97_spill] sm:$0xff] %v2980_v56  ;;  %2109 = vset.pattern.permute.xlu1 %v3819_v45 }
 0x192   :  { %1293 = vperm.xlu1 %2109, %v2273_v7  }
 0x194   :  { %v2985_v24 = vpop.permute.xlu0 %997 }
 0x195   :  { %3876 = vst [vmem:[#allocation98_spill] sm:$0xff] %v2985_v24  ;;  %v2987_v6 = vpop.permute.xlu1 %957 }
 0x196   :  { %3877 = vst [vmem:[#allocation99_spill] sm:$0xff] %v2987_v6  ;;  %2110 = vset.pattern.permute.xlu1 %v3794_v48  ;;  %v3893_v6 = vld [vmem:[#allocation23_spill] sm:$0xff] }
 0x197   :  { %781 = vperm.xlu1 %2110, %v2398_v28  }
 0x198   :  { %v930_v19 = vpop.permute.xlu0 %929 }
 0x199   :  { %v1018_v56 = vmul.f32 %v2991_v21, %v930_v19 }
 0x19a   :  { %v2995_v36 = vpop.permute.xlu1 %1337 }
 0x19b   :  { %v2997_v57 = vadd.f32 %v1018_v56, %v854_v8  ;;  %2111 = vset.pattern.permute.xlu1 %v3806_v60 }
 0x19c   :  { %1165 = vperm.xlu1 %2111, %v2386_v26  }
 0x19d   :  { %3878 = vst [vmem:[#allocation100_spill] sm:$0xff] %v2997_v57  ;;  %v3001_v7 = vpop.permute.xlu0 %1137 }
 0x19f   :  { %v3003_v24 = vpop.permute.xlu1 %889 }
 0x1a0   :  { %3879 = vst [vmem:[#allocation101_spill] sm:$0xff] %v3003_v24  ;;  %1169 = vperm.xlu1 %2111, %v2381_v25   ;;  %v3891_v24 = vld [vmem:[#allocation21_spill] sm:$0xff] }
 0x1a1   :  { %v3006_v23 = vpop.permute.xlu0 %1069 }
 0x1a3   :  { %v3008_v22 = vpop.permute.xlu1 %893 }
 0x1a4   :  { %3880 = vst [vmem:[#allocation102_spill] sm:$0xff] %v3008_v22  ;;  %2112 = vset.pattern.permute.xlu1 %v3794_v48 }
 0x1a5   :  { %721 = vperm.xlu1 %2112, %v2297_v11   ;;  %v3012_v19 = vpop.permute.xlu0 %1145 }
 0x1a6   :  { %3881 = vst [vmem:[#allocation103_spill] sm:$0xff] %v3012_v19 }
 0x1a8   :  { %v3014_v56 = vpop.permute.xlu1 %1277 }
 0x1a9   :  { %3882 = vst [vmem:[#allocation104_spill] sm:$0xff] %v3014_v56  ;;  %2113 = vset.pattern.permute.xlu1 %v3806_v60  ;;  %v3017_v26 = vpop.permute.xlu0 %1077 }
 0x1aa   :  { %3883 = vst [vmem:[#allocation105_spill] sm:$0xff] %v3017_v26  ;;  %1105 = vperm.xlu1 %2113, %v2285_v9   ;;  %v258_v9 = vmul.f32 %v2856_v47, %v2522_v34  ;;  %v263_v34 = vmul.f32 %v2856_v47, %v2542_v41  ;;  %v274_v41 = vmul.f32 %v2856_v47, %v2580_v54  ;;  %v3892_v54 = vld [vmem:[#allocation22_spill] sm:$0xff] }
 0x1ac   :  { %v450_v19 = vadd.f32 %v3893_v6, %v258_v9  ;;  %v3898_v6 = vld [vmem:[#allocation33_spill] sm:$0xff]  ;;  %v3899_v9 = vld [vmem:[#allocation48_spill] sm:$0xff] }
 0x1ad   :  { %v3020_v8 = vpop.permute.xlu1 %769  ;;  %v3022_v57 = vpop.permute.xlu0 %1153 }
 0x1ae   :  { %3884 = vst [vmem:[#allocation106_spill] sm:$0xff] %v3020_v8  ;;  %3885 = vst [vmem:[#allocation107_spill] sm:$0xff] %v3022_v57  ;;  %2114 = vset.pattern.permute.xlu1 %v3868_v12  ;;  %v256_v8 = vmul.f32 %v2856_v47, %v2524_v35  ;;  %v259_v12 = vmul.f32 %v2856_v47, %v2530_v37  ;;  %v262_v35 = vmul.f32 %v2856_v47, %v2544_v42  ;;  %v3890_v57 = vld [vmem:[#allocation20_spill] sm:$0xff] }
 0x1af   :  { %593 = vperm.xlu1 %2114, %v2410_v30   ;;  %v257_v30 = vmul.f32 %v2856_v47, %v2532_v38  ;;  %v619_v37 = vmul.f32 %v2867_v4, %v2748_v33  ;;  %v273_v38 = vmul.f32 %v2856_v47, %v2572_v51  ;;  %v277_v42 = vmul.f32 %v2856_v47, %v2584_v13 }
 0x1b0   :  { %v455_v33 = vadd.f32 %v2640_v43, %v263_v34  ;;  %v1198_v51 = vsub.s32 4, %v2835_v49  ;;  %v448_v26 = vadd.f32 %v3891_v24, %v256_v8  ;;  %v451_v56 = vadd.f32 %v3892_v54, %v259_v12  ;;  %v3894_v34 = vld [vmem:[#allocation24_spill] sm:$0xff] }
 0x1b1   :  { %v3026_v18 = vpop.permute.xlu0 %1085  ;;  %v453_v17 = vadd.f32 %v3894_v34, %v261_v32  ;;  %v1394_v24 = vsub.s32 5, %v2835_v49  ;;  %v465_v8 = vadd.f32 %v3898_v6, %v273_v38  ;;  %v3900_v32 = vld [vmem:[#allocation34_spill] sm:$0xff]  ;;  %v3905_v38 = vld [vmem:[#allocation51_spill] sm:$0xff] }
 0x1b2   :  { %3886 = vst [vmem:[#allocation108_spill] sm:$0xff] %v3026_v18  ;;  %v3028_v11 = vpop.permute.xlu1 %1149  ;;  %v3889_v18 = vld [vmem:[#allocation13_spill] sm:$0xff]  ;;  %v651_v13 = vadd.f32 %v619_v37, %v455_v33  ;;  %v464_v33 = vadd.f32 %v3900_v32, %v272_v39  ;;  %v3903_v34 = vld [vmem:[#allocation50_spill] sm:$0xff]  ;;  %v615_v6 = vmul.f32 %v2867_v4, %v3905_v38 }
 0x1b3   :  { %3887 = vst [vmem:[#allocation109_spill] sm:$0xff] %v3028_v11  ;;  %2115 = vset.pattern.permute.xlu1 %v3810_v61  ;;  %v281_v52 = vmul.f32 %v2856_v47, %v3889_v18  ;;  %v3895_v18 = vld [vmem:[#allocation25_spill] sm:$0xff] }
 0x1b4   :  { %977 = vperm.xlu1 %2115, %v2398_v28   ;;  %v260_v28 = vmul.f32 %v2856_v47, %v2538_v40  ;;  %v275_v40 = vmul.f32 %v2856_v47, %v2578_v53  ;;  %v449_v53 = vadd.f32 %v3890_v57, %v257_v30  ;;  %v3896_v57 = vld [vmem:[#allocation26_spill] sm:$0xff]  ;;  %v3909_v39 = vld [vmem:[#allocation37_spill] sm:$0xff] }
 0x1b5   :  { %v3032_v58 = vpop.permute.xlu0 %1161  ;;  %v454_v30 = vadd.f32 %v3896_v57, %v262_v35  ;;  %v3902_v35 = vld [vmem:[#allocation49_spill] sm:$0xff] }
 0x1b6   :  { %3888 = vst [vmem:[#allocation110_spill] sm:$0xff] %v3032_v58  ;;  %v612_v49 = vmul.f32 %v2867_v4, %v3902_v35 }
 0x1b7   :  { %v3044_v11 = vpop.permute.xlu1 %701 }
 0x1b8   :  { %981 = vperm.xlu1 %2115, %v2393_v27   ;;  %v276_v27 = vmul.f32 %v2856_v47, %v2586_v55  ;;  %v1011_v55 = vmul.f32 %v2991_v21, %v2952_v3  ;;  %v452_v47 = vadd.f32 %v3895_v18, %v260_v28  ;;  %v613_v3 = vmul.f32 %v2867_v4, %v3899_v9  ;;  %v3901_v28 = vld [vmem:[#allocation35_spill] sm:$0xff]  ;;  %v3904_v18 = vld [vmem:[#allocation36_spill] sm:$0xff]  ;;  %v3906_v9 = vld [vmem:[#allocation61_spill] sm:$0xff] }
 0x1b9   :  { %v3063_v58 = vpop.permute.xlu0 %1093  ;;  %v467_v54 = vadd.f32 %v3901_v28, %v275_v40  ;;  %v466_v57 = vadd.f32 %v3904_v18, %v274_v41  ;;  %v469_v40 = vadd.f32 %v3909_v39, %v277_v42  ;;  %v3911_v28 = vld [vmem:[#allocation52_spill] sm:$0xff]  ;;  %v3913_v18 = vld [vmem:[#allocation41_spill] sm:$0xff]  ;;  %v3916_v39 = vld [vmem:[#allocation54_spill] sm:$0xff] }
 0x1ba   :  { %v616_v35 = vmul.f32 %v2867_v4, %v3911_v28  ;;  %v473_v38 = vadd.f32 %v3913_v18, %v281_v52  ;;  %v3917_v28 = vld [vmem:[#allocation62_spill] sm:$0xff] }
 0x1bb   :  { %v706_v22 = vpop.permute.xlu1 %705  ;;  %v629_v52 = vmul.f32 %v2867_v4, %v3917_v28 }
 0x1bc   :  { %v815_v43 = vmul.f32 %v2881_v59, %v706_v22  ;;  %2116 = vset.pattern.permute.xlu1 %v3819_v45  ;;  %v3092_v22 = vrot.slane %v2849_v20, %v1198_v51  ;;  %v628_v51 = vmul.f32 %v2867_v4, %v3906_v9  ;;  %v645_v9 = vadd.f32 %v613_v3, %v449_v53 }
 0x1bd   :  { %1365 = vperm.xlu1 %2116, %v2381_v25   ;;  %v3086_v12 = vpop.permute.xlu0 %1101  ;;  %v614_v25 = vmul.f32 %v2867_v4, %v3903_v34  ;;  %v3114_v34 = vrot.slane %v2849_v20, %v1394_v24  ;;  %v644_v20 = vadd.f32 %v612_v49, %v448_v26  ;;  %v647_v53 = vadd.f32 %v615_v6, %v451_v56  ;;  %v3921_v26 = vld [vmem:[#allocation73_spill] sm:$0xff]  ;;  %v3925_v6 = vld [vmem:[#allocation66_spill] sm:$0xff] }
 0x1be   :  { %3897 = vst [vmem:[#allocation13_spill] sm:$0xff] %v3086_v12  ;;  %v847_v37 = vadd.f32 %v815_v43, %v651_v13  ;;  %v3910_v43 = vld [vmem:[#allocation38_spill] sm:$0xff]  ;;  %v660_v3 = vadd.f32 %v628_v51, %v464_v33  ;;  %v808_v49 = vmul.f32 %v2881_v59, %v3921_v26  ;;  %v633_v51 = vmul.f32 %v2867_v4, %v3925_v6  ;;  %v3927_v26 = vld [vmem:[#allocation71_spill] sm:$0xff] }
 0x1bf   :  { %v468_v32 = vadd.f32 %v3910_v43, %v276_v27  ;;  %v2144_v27 = vld [vmem:[%s3751_s1 + $0x50] sm:$0xff]  ;;  %v3127_v24 = vadd.f32 %v614_v25, %v450_v19  ;;  %v618_v43 = vmul.f32 %v2867_v4, %v3916_v39 }
 0x1c0   :  { %v3105_v12 = vpop.permute.xlu1 %1089  ;;  %v3107_v13 = vadd.f32 %v1011_v55, %v847_v37  ;;  %v3915_v37 = vld [vmem:[#allocation76_spill] sm:$0xff]  ;;  %v3922_v25 = vld [vmem:[#allocation78_spill] sm:$0xff] }
 0x1c1   :  { %3907 = vst [vmem:[#allocation20_spill] sm:$0xff] %v3105_v12  ;;  %2117 = vset.pattern.permute.xlu1 %v3810_v61  ;;  %v3117_v41 = vpop.permute.xlu0 %1177  ;;  %v3914_v12 = vld [vmem:[#allocation53_spill] sm:$0xff]  ;;  %v824_v42 = vmul.f32 %v2881_v59, %v3915_v37  ;;  %v3919_v37 = vld [vmem:[#allocation64_spill] sm:$0xff]  ;;  %v809_v39 = vmul.f32 %v2881_v59, %v3922_v25  ;;  %v825_v25 = vmul.f32 %v2881_v59, %v3927_v26  ;;  %v3931_v26 = vld [vmem:[#allocation79_spill] sm:$0xff] }
 0x1c2   :  { %3908 = vst [vmem:[#allocation21_spill] sm:$0xff] %v3107_v13  ;;  %3912 = vst [vmem:[#allocation22_spill] sm:$0xff] %v3117_v41  ;;  %v617_v55 = vmul.f32 %v2867_v4, %v3914_v12  ;;  %913 = vperm.xlu1 %2117, %v2144_v27   ;;  %v3918_v12 = vld [vmem:[#allocation63_spill] sm:$0xff]  ;;  %v631_v41 = vmul.f32 %v2867_v4, %v3919_v37  ;;  %v3137_v13 = vadd.f32 %v616_v35, %v452_v47  ;;  %v3920_v27 = vld [vmem:[#allocation65_spill] sm:$0xff] }
 0x1c3   :  { %v630_v18 = vmul.f32 %v2867_v4, %v3918_v12  ;;  %v632_v19 = vmul.f32 %v2867_v4, %v3920_v27  ;;  %v3926_v47 = vld [vmem:[#allocation69_spill] sm:$0xff]  ;;  %v856_v12 = vadd.f32 %v824_v42, %v660_v3  ;;  %v3156_v37 = vadd.f32 %v618_v43, %v454_v30 }
 0x1c4   :  { %v3149_v33 = vadd.f32 %v617_v55, %v453_v17  ;;  %v637_v35 = vmul.f32 %v2867_v4, %v3926_v47  ;;  %v661_v27 = vadd.f32 %v629_v52, %v465_v8  ;;  %v2145_v17 = vld [vmem:[%s3751_s1 + $0x40] sm:$0xff]  ;;  %v663_v6 = vadd.f32 %v631_v41, %v467_v54  ;;  %v3929_v47 = vld [vmem:[#allocation75_spill] sm:$0xff]  ;;  %v3930_v3 = vld [vmem:[#allocation85_spill] sm:$0xff] }
 0x1c5   :  { %v3145_v28 = vpop.permute.xlu1 %961  ;;  %v3147_v56 = vpop.permute.xlu0 %1109  ;;  %v662_v55 = vadd.f32 %v630_v18, %v466_v57  ;;  %v1020_v42 = vmul.f32 %v2991_v21, %v3929_v47  ;;  %v1216_v30 = vmul.f32 %v3092_v22, %v3930_v3  ;;  %v664_v8 = vadd.f32 %v632_v19, %v468_v32  ;;  %v3932_v32 = vld [vmem:[#allocation80_spill] sm:$0xff] }
 0x1c6   :  { %3923 = vst [vmem:[#allocation23_spill] sm:$0xff] %v3145_v28  ;;  %3924 = vst [vmem:[#allocation24_spill] sm:$0xff] %v3147_v56  ;;  %2118 = vset.pattern.permute.xlu1 %v3819_v45  ;;  %v3928_v28 = vld [vmem:[#allocation77_spill] sm:$0xff]  ;;  %v840_v43 = vadd.f32 %v808_v49, %v644_v20  ;;  %v841_v52 = vadd.f32 %v809_v39, %v645_v9  ;;  %v1005_v45 = vmul.f32 %v2991_v21, %v3931_v26 }
 0x1c7   :  { %v1004_v56 = vmul.f32 %v2991_v21, %v3928_v28  ;;  %1297 = vperm.xlu1 %2118, %v2145_v17   ;;  %v3175_v4 = vadd.f32 %v633_v51, %v469_v40  ;;  %v3177_v57 = vadd.f32 %v637_v35, %v473_v38  ;;  %v1052_v54 = vadd.f32 %v1020_v42, %v856_v12  ;;  %v3933_v20 = vld [vmem:[#allocation81_spill] sm:$0xff]  ;;  %v3934_v40 = vld [vmem:[#allocation83_spill] sm:$0xff] }
 0x1c8   :  { %v1412_v41 = vmul.f32 %v3114_v34, %v2925_v31  ;;  %v857_v18 = vadd.f32 %v825_v25, %v661_v27  ;;  %v826_v9 = vmul.f32 %v2881_v59, %v3932_v32  ;;  %v827_v19 = vmul.f32 %v2881_v59, %v3933_v20  ;;  %v2146_v49 = vld [vmem:[%s3751_s1 + $0x48] sm:$0xff] }
 0x1c9   :  { %v3171_v28 = vpop.permute.xlu1 %965  ;;  %v3173_v61 = vpop.permute.xlu0 %1117  ;;  %v1036_v17 = vadd.f32 %v1004_v56, %v840_v43  ;;  %v828_v38 = vmul.f32 %v2881_v59, %v3934_v40  ;;  %v1248_v39 = vadd.f32 %v1216_v30, %v1052_v54  ;;  %v810_v31 = vmul.f32 %v2881_v59, %v2883_v29 }
 0x1ca   :  { %v811_v56 = vmul.f32 %v2881_v59, %v2893_v62  ;;  %v1037_v51 = vadd.f32 %v1005_v45, %v841_v52  ;;  %v1201_v35 = vmul.f32 %v3092_v22, %v2904_v63  ;;  %v1023_v12 = vmul.f32 %v2991_v21, %v2915_v0 }
 0x1cb   :  { %1301 = vperm.xlu1 %2118, %v2146_v49   ;;  %v1021_v27 = vmul.f32 %v2991_v21, %v2935_v2  ;;  %v1006_v47 = vmul.f32 %v2991_v21, %v2931_v1  ;;  %v1007_v29 = vmul.f32 %v2991_v21, %v2937_v44  ;;  %v1022_v45 = vmul.f32 %v2991_v21, %v2941_v46 }
 0x1cc   :  { %v1444_v63 = vadd.f32 %v1412_v41, %v1248_v39  ;;  %v858_v42 = vadd.f32 %v826_v9, %v662_v55  ;;  %v859_v3 = vadd.f32 %v827_v19, %v663_v6  ;;  %v1397_v0 = vmul.f32 %v3114_v34, %v2945_v10  ;;  %v3223_v55 = vld [vmem:[%s3751_s1 + $0xe8] sm:$0xff]  ;;  %v3935_v39 = vld [vmem:[#allocation96_spill] sm:$0xff] }
 0x1cd   :  { %v3200_v25 = vpop.permute.xlu0 %1193  ;;  %v1217_v2 = vmul.f32 %v3092_v22, %v3001_v7  ;;  %v3215_v1 = vadd.f32 %v828_v38, %v664_v8  ;;  %v842_v44 = vadd.f32 %v810_v31, %v3127_v24  ;;  %v843_v30 = vadd.f32 %v811_v56, %v647_v53 }
 0x1ce   :  { %v3208_v62 = vpop.permute.xlu1 %1349  ;;  %v814_v46 = vmul.f32 %v2881_v59, %v3044_v11  ;;  %v1233_v10 = vadd.f32 %v1201_v35, %v1037_v51  ;;  %v1055_v6 = vadd.f32 %v1023_v12, %v859_v3  ;;  %v1053_v7 = vadd.f32 %v1021_v27, %v857_v18  ;;  %v3936_v51 = vld [vmem:[#allocation103_spill] sm:$0xff]  ;;  %v3938_v3 = vld [vmem:[#allocation102_spill] sm:$0xff] }
 0x1cf   :  { %2119 = vset.pattern.permute.xlu1 %v3794_v48  ;;  %v1218_v8 = vmul.f32 %v3092_v22, %v2961_v5  ;;  %v1038_v43 = vadd.f32 %v1006_v47, %v842_v44  ;;  %v1039_v52 = vadd.f32 %v1007_v29, %v843_v30  ;;  %v1054_v24 = vadd.f32 %v1022_v45, %v858_v42  ;;  %v3937_v47 = vld [vmem:[#allocation99_spill] sm:$0xff] }
 0x1d0   :  { %793 = vperm.xlu1 %2119, %v3223_v55   ;;  %v1476_v26 = vmax.f32 %v1444_v63, 0.0  ;;  %v1429_v54 = vadd.f32 %v1397_v0, %v1233_v10  ;;  %v1249_v11 = vadd.f32 %v1217_v2, %v1053_v7  ;;  %v1200_v41 = vmul.f32 %v3092_v22, %v3006_v23  ;;  %v3940_v7 = vld [vmem:[#allocation105_spill] sm:$0xff] }
 0x1d1   :  { %v1414_v20 = vmul.f32 %v3114_v34, %v2995_v36  ;;  %v846_v18 = vadd.f32 %v814_v46, %v3156_v37  ;;  %v1206_v5 = vmul.f32 %v3092_v22, %v3063_v58  ;;  %v1024_v49 = vmul.f32 %v2991_v21, %v2947_v16  ;;  %v3245_v36 = vld [vmem:[%s3751_s1 + $0xd0] sm:$0xff]  ;;  %v3939_v46 = vld [vmem:[#allocation104_spill] sm:$0xff] }
 0x1d2   :  { %v1334_v53 = vpop.permute.xlu0 %1333  ;;  %v829_v23 = vmul.f32 %v2881_v59, %v2954_v14  ;;  %v1250_v40 = vadd.f32 %v1218_v8, %v1054_v24  ;;  %v812_v58 = vmul.f32 %v2881_v59, %v2967_v15  ;;  %v813_v38 = vmul.f32 %v2881_v59, %v2972_v50 }
 0x1d3   :  { %v1413_v32 = vmul.f32 %v3114_v34, %v1334_v53  ;;  %v898_v9 = vpop.permute.xlu1 %897  ;;  %v1203_v16 = vmul.f32 %v3092_v22, %v3935_v39  ;;  %v1232_v56 = vadd.f32 %v1200_v41, %v1036_v17  ;;  %v1219_v35 = vmul.f32 %v3092_v22, %v3936_v51  ;;  %v3941_v41 = vld [vmem:[#allocation101_spill] sm:$0xff] }
 0x1d4   :  { %v1010_v19 = vmul.f32 %v2991_v21, %v898_v9  ;;  %2120 = vset.pattern.permute.xlu1 %v3806_v60  ;;  %v1025_v29 = vmul.f32 %v2991_v21, %v3937_v47  ;;  %v1446_v45 = vadd.f32 %v1414_v20, %v1250_v40  ;;  %v1461_v63 = vmax.f32 %v1429_v54, 0.0  ;;  %v3942_v9 = vld [vmem:[#allocation20_spill] sm:$0xff] }
 0x1d5   :  { %1173 = vperm.xlu1 %2120, %v3245_v36   ;;  %v1445_v37 = vadd.f32 %v1413_v32, %v1249_v11  ;;  %v861_v50 = vadd.f32 %v829_v23, %v3175_v4  ;;  %v1009_v0 = vmul.f32 %v2991_v21, %v3938_v3  ;;  %v844_v44 = vadd.f32 %v812_v58, %v3137_v13  ;;  %v2149_v4 = vld [vmem:[%s3751_s1 + $0x60] sm:$0xff] }
 0x1d6   :  { %v1042_v31 = vadd.f32 %v1010_v19, %v846_v18  ;;  %v1266_v14 = vpop.permute.xlu0 %1265  ;;  %v845_v30 = vadd.f32 %v813_v38, %v3149_v33  ;;  %v1399_v10 = vmul.f32 %v3114_v34, %v3939_v46  ;;  %v1202_v8 = vmul.f32 %v3092_v22, %v3940_v7  ;;  %v3943_v19 = vld [vmem:[#allocation107_spill] sm:$0xff]  ;;  %v3944_v58 = vld [vmem:[#allocation108_spill] sm:$0xff] }
 0x1d7   :  { %v1396_v12 = vmul.f32 %v3114_v34, %v1266_v14  ;;  %v1477_v27 = vmax.f32 %v1445_v37, 0.0  ;;  %v1235_v53 = vadd.f32 %v1203_v16, %v1039_v52  ;;  %v1251_v54 = vadd.f32 %v1219_v35, %v1055_v6  ;;  %v3287_v16 = vld [vmem:[%s3751_s1 + $0x68] sm:$0xff]  ;;  %v3305_v7 = vld [vmem:[%s3751_s1 + $0x58] sm:$0xff] }
 0x1d8   :  { %v1282_v15 = vpop.permute.xlu1 %1281  ;;  %v3259_v42 = vadd.f32 %v1206_v5, %v1042_v31  ;;  %v1057_v13 = vadd.f32 %v1025_v29, %v861_v50  ;;  %v1478_v33 = vmax.f32 %v1446_v45, 0.0  ;;  %v1008_v32 = vmul.f32 %v2991_v21, %v3941_v41  ;;  %v3945_v14 = vld [vmem:[#allocation109_spill] sm:$0xff]  ;;  %v3946_v45 = vld [vmem:[#allocation92_spill] sm:$0xff] }
 0x1d9   :  { %v1428_v17 = vadd.f32 %v1396_v12, %v1232_v56  ;;  %2121 = vset.pattern.permute.xlu1 %v3794_v48  ;;  %v2005_v2 = vpack.c.bf16 %v1477_v27, %v1476_v26  ;;  %v1205_v20 = vmul.f32 %v3092_v22, %v3942_v9  ;;  %v1041_v5 = vadd.f32 %v1009_v0, %v845_v30 }
 0x1da   :  { %725 = vperm.xlu1 %2121, %v2149_v4   ;;  %v1342_v24 = vpop.permute.xlu0 %1341  ;;  %v1221_v23 = vmul.f32 %v3092_v22, %v3943_v19  ;;  %v1431_v6 = vadd.f32 %v1399_v10, %v1235_v53  ;;  %v1234_v37 = vadd.f32 %v1202_v8, %v1038_v43  ;;  %v1204_v38 = vmul.f32 %v3092_v22, %v3944_v58  ;;  %v3947_v8 = vld [vmem:[#allocation6_spill] sm:$0xff]  ;;  %v3951_v19 = vld [vmem:[#allocation55_spill] sm:$0xff] }
 0x1db   :  { %v1460_v11 = vmax.f32 %v1428_v17, 0.0  ;;  %v1415_v26 = vmul.f32 %v3114_v34, %v1342_v24  ;;  %2006 = vmatprep.subr.bf16.mxu0 %v2005_v2  ;;  %v1220_v56 = vmul.f32 %v3092_v22, %v3945_v14  ;;  %v1417_v51 = vmul.f32 %v3114_v34, %v3208_v62  ;;  %v3948_v4 = vld [vmem:[#allocation82_spill] sm:$0xff] }
 0x1dc   :  { %v1286_v18 = vpop.permute.xlu1 %1285  ;;  %v1056_v12 = vadd.f32 %v1024_v49, %v3215_v1  ;;  %v1040_v27 = vadd.f32 %v1008_v32, %v844_v44  ;;  %v1237_v47 = vadd.f32 %v1205_v20, %v1041_v5  ;;  %v1400_v29 = vmul.f32 %v3114_v34, %v1282_v15 }
 0x1dd   :  { %v1447_v40 = vadd.f32 %v1415_v26, %v1251_v54  ;;  %v2007_v52 = vpack.c.bf16 %v1461_v63, %v1460_v11  ;;  %v1401_v39 = vmul.f32 %v3114_v34, %v1286_v18  ;;  %v1029_v63 = vmul.f32 %v2991_v21, %v3946_v45  ;;  %v3950_v18 = vld [vmem:[#allocation28_spill] sm:$0xff] }
 0x1de   :  { %729 = vperm.xlu1 %2121, %v3287_v16   ;;  %v1274_v31 = vpop.permute.xlu0 %1273  ;;  %v1253_v50 = vadd.f32 %v1221_v23, %v1057_v13  ;;  %v1463_v2 = vmax.f32 %v1431_v6, 0.0  ;;  %v1236_v30 = vadd.f32 %v1204_v38, %v1040_v27  ;;  %v1252_v1 = vadd.f32 %v1220_v56, %v1056_v12  ;;  %v3952_v23 = vld [vmem:[#allocation84_spill] sm:$0xff] }
 0x1df   :  { %v1479_v43 = vmax.f32 %v1447_v40, 0.0  ;;  %v1398_v35 = vmul.f32 %v3114_v34, %v1274_v31  ;;  %2008 = vmatpush3.bf16.msra.mxu0 %v2007_v52  ;;  %v1433_v62 = vadd.f32 %v1401_v39, %v1237_v47  ;;  %v264_v24 = vmul.f32 %v3948_v4, %v3947_v8  ;;  %v3953_v39 = vld [vmem:[#allocation93_spill] sm:$0xff] }
 0x1e0   :  { %v1449_v49 = vadd.f32 %v1417_v51, %v1253_v50  ;;  %v1432_v53 = vadd.f32 %v1400_v29, %v1236_v30  ;;  %v3949_v20 = vmov 1   ;;  %v620_v40 = vmul.f32 %v3952_v23, %v3951_v19  ;;  %v3330_v51 = vld [vmem:[%s3751_s1 + $0xe0] sm:$0xff]  ;;  %v2154_v50 = vld [vmem:[%s3751_s1 + $0xd8] sm:$0xff] }
 0x1e1   :  { %v1430_v3 = vadd.f32 %v1398_v35, %v1234_v37  ;;  %v778_v0 = vpop.permute.xlu1 %777  ;;  %v2009_v17 = vpack.c.bf16 %v1479_v43, %v1478_v33  ;;  %v1465_v13 = vmax.f32 %v1433_v62, 0.0  ;;  %v456_v5 = vadd.f32 %v3950_v18, %v264_v24  ;;  %v3955_v43 = vld [vmem:[#allocation13_spill] sm:$0xff]  ;;  %v3959_v62 = vld [vmem:[#allocation42_spill] sm:$0xff]  ;;  %v3963_v24 = vld [vmem:[#allocation67_spill] sm:$0xff] }
 0x1e2   :  { %v833_v46 = vmul.f32 %v2881_v59, %v778_v0  ;;  %2122 = vset.pattern.permute.xlu1 %v3806_v60  ;;  %v1346_v10 = vpop.permute.xlu0 %1345  ;;  %v1481_v32 = vmax.f32 %v1449_v49, 0.0  ;;  %v1464_v52 = vmax.f32 %v1432_v53, 0.0  ;;  %v1012_v31 = vmul.f32 %v2991_v21, %v3953_v39  ;;  %v3961_v49 = vld [vmem:[#allocation11_spill] sm:$0xff]  ;;  %v3967_v18 = vld [vmem:[#allocation106_spill] sm:$0xff] }
 0x1e3   :  { %v1462_v44 = vmax.f32 %v1430_v3, 0.0  ;;  %v1416_v15 = vmul.f32 %v3114_v34, %v1346_v10  ;;  %1113 = vperm.xlu1 %2122, %v3305_v7   ;;  %2010 = vmatprep.subr.bf16.mxu0 %v2009_v17  ;;  %v652_v38 = vadd.f32 %v620_v40, %v456_v5  ;;  %v3954_v56 = vmov 3   ;;  %v3957_v3 = vld [vmem:[#allocation12_spill] sm:$0xff]  ;;  %v3958_v17 = vld [vmem:[#allocation14_spill] sm:$0xff] }
 0x1e4   :  { %v865_v54 = vadd.f32 %v833_v46, %v3177_v57  ;;  %v3320_v57 = vld [vmem:[%s3751_s1 + $0xf8] sm:$0xff]  ;;  %v2015_v37 = vpack.c.bf16 %v1465_v13, %v1464_v52  ;;  %v1208_v35 = vmul.f32 %v3092_v22, %v3955_v43  ;;  %v3956_v29 = vmov 5   ;;  %v3960_v10 = vld [vmem:[#allocation88_spill] sm:$0xff] }
 0x1e5   :  { %v1448_v11 = vadd.f32 %v1416_v15, %v1252_v1  ;;  %v2011_v26 = vpack.c.bf16 %v1463_v2, %v1462_v44  ;;  %v278_v0 = vmul.f32 %v3948_v4, %v3957_v3  ;;  %v283_v2 = vmul.f32 %v3948_v4, %v3958_v17  ;;  %v3962_v15 = vld [vmem:[#allocation40_spill] sm:$0xff]  ;;  %v3965_v13 = vld [vmem:[#allocation39_spill] sm:$0xff] }
 0x1e6   :  { %v1158_v33 = vpop.permute.xlu1 %1157  ;;  %v3311_v41 = vadd.f32 %v1029_v63, %v865_v54  ;;  %v279_v44 = vmul.f32 %v3948_v4, %v3961_v49  ;;  %v634_v53 = vmul.f32 %v3952_v23, %v3963_v24  ;;  %v3964_v54 = vld [vmem:[#allocation68_spill] sm:$0xff]  ;;  %v831_v5 = vmul.f32 %v2881_v59, %v3967_v18 }
 0x1e7   :  { %v1480_v9 = vmax.f32 %v1448_v11, 0.0  ;;  %2124 = vset.pattern.permute.xlu1 %v3949_v20  ;;  %2012 = vmatpush3.bf16.msra.mxu0 %v2011_v26  ;;  %v475_v46 = vadd.f32 %v3959_v62, %v283_v2  ;;  %v470_v8 = vadd.f32 %v3962_v15, %v278_v0  ;;  %v635_v11 = vmul.f32 %v3952_v23, %v3964_v54  ;;  %v1290_v62 = vpop.permute.xlu0 %1289  ;;  %v3970_v15 = vld [vmem:[#allocation15_spill] sm:$0xff]  ;;  %v3971_v54 = vld [vmem:[#allocation21_spill] sm:$0xff] }
 0x1e8   :  { %605 = vperm.xlu1 %2124, %v3320_v57  }
 0x1e9   :  { %v2013_v6 = vpack.c.bf16 %v1481_v32, %v1480_v9  ;;  %v471_v32 = vadd.f32 %v3965_v13, %v279_v44  ;;  %v3966_v9 = vld [vmem:[#allocation86_spill] sm:$0xff]  ;;  %v666_v52 = vadd.f32 %v634_v53, %v470_v8  ;;  %v282_v8 = vmul.f32 %v3948_v4, %v3970_v15  ;;  %v3972_v13 = vld [vmem:[#allocation43_spill] sm:$0xff] }
 0x1ea   :  { %v830_v20 = vmul.f32 %v2881_v59, %v3966_v9  ;;  %v3973_v9 = vld [vmem:[#allocation70_spill] sm:$0xff] }
 0x1eb   :  { %v710_v58 = vpop.permute.xlu1 %709  ;;  %2014 = vmatprep.subr.bf16.mxu0 %v2013_v6  ;;  %v667_v6 = vadd.f32 %v635_v11, %v471_v32  ;;  %v474_v32 = vadd.f32 %v3972_v13, %v282_v8  ;;  %v3982_v13 = vld [vmem:[#allocation22_spill] sm:$0xff] }
 0x1ec   :  { %v816_v14 = vmul.f32 %v2881_v59, %v710_v58  ;;  %2125 = vset.pattern.permute.xlu1 %v3954_v56  ;;  %2016 = vmatpush3.bf16.msra.mxu0 %v2015_v37  ;;  %v3968_v37 = vld [vmem:[#allocation23_spill] sm:$0xff]  ;;  %v862_v39 = vadd.f32 %v830_v20, %v666_v52 }
 0x1ed   :  { %985 = vperm.xlu1 %2125, %v3330_v51   ;;  %v1026_v58 = vmul.f32 %v2991_v21, %v3968_v37  ;;  %v2156_v20 = vld [vmem:[%s3751_s1 + $0x78] sm:$0xff] }
 0x1ee   :  { %v848_v12 = vadd.f32 %v816_v14, %v652_v38  ;;  %v1027_v38 = vmul.f32 %v2991_v21, %v3171_v28  ;;  %v1222_v14 = vmul.f32 %v3092_v22, %v1158_v33  ;;  %v3384_v28 = vld [vmem:[%s3751_s1 + $0xf0] sm:$0xff] }
 0x1ef   :  { %v3335_v27 = vpop.permute.xlu1 %713 }
 0x1f0   :  { %v1044_v47 = vadd.f32 %v1012_v31, %v848_v12  ;;  %v863_v31 = vadd.f32 %v831_v5, %v667_v6 }
 0x1f1   :  { %2126 = vset.pattern.permute.xlu1 %v3956_v29 }
 0x1f2   :  { %1369 = vperm.xlu1 %2126, %v3245_v36   ;;  %v3339_v45 = vadd.f32 %v1208_v35, %v1044_v47  ;;  %v835_v36 = vmul.f32 %v2881_v59, %v3960_v10  ;;  %v3969_v35 = vld [vmem:[#allocation110_spill] sm:$0xff]  ;;  %v1058_v47 = vadd.f32 %v1026_v58, %v862_v39 }
 0x1f3   :  { %v1223_v12 = vmul.f32 %v3092_v22, %v3969_v35 }
 0x1f4   :  { %v1098_v63 = vpop.permute.xlu1 %1097 }
 0x1f5   :  { %v1207_v49 = vmul.f32 %v3092_v22, %v1098_v63  ;;  %v638_v63 = vmul.f32 %v3952_v23, %v3973_v9 }
 0x1f6   :  { %1373 = vperm.xlu1 %2126, %v2154_v50   ;;  %v1059_v50 = vadd.f32 %v1027_v38, %v863_v31  ;;  %v3974_v31 = vld [vmem:[#allocation7_spill] sm:$0xff] }
 0x1f7   :  { %v1239_v11 = vadd.f32 %v1207_v49, %v3971_v54  ;;  %v670_v6 = vadd.f32 %v638_v63, %v474_v32  ;;  %v1362_v54 = vpop.permute.xlu0 %1361  ;;  %v1227_v32 = vmul.f32 %v3092_v22, %v3982_v13 }
 0x1f8   :  { %v1255_v17 = vadd.f32 %v1223_v12, %v1059_v50  ;;  %v3976_v12 = vld [vmem:[#allocation29_spill] sm:$0xff]  ;;  %v1420_v63 = vmul.f32 %v3114_v34, %v1362_v54 }
 0x1f9   :  { %v590_v30 = vpop.permute.xlu1 %589 }
 0x1fa   :  { %v639_v1 = vmul.f32 %v3952_v23, %v590_v30  ;;  %2127 = vset.pattern.permute.xlu1 %v3954_v56 }
 0x1fb   :  { %925 = vperm.xlu1 %2127, %v3287_v16  }
 0x1fc   :  { %v671_v26 = vadd.f32 %v639_v1, %v475_v46  ;;  %v1402_v1 = vmul.f32 %v3114_v34, %v1290_v62  ;;  %v3978_v62 = vld [vmem:[#allocation17_spill] sm:$0xff] }
 0x1fe   :  { %v3366_v19 = vpop.permute.xlu1 %969  ;;  %v3368_v40 = vadd.f32 %v835_v36, %v671_v26  ;;  %v1434_v53 = vadd.f32 %v1402_v1, %v3259_v42 }
 0x1ff   :  { %2128 = vset.pattern.permute.xlu1 %v3956_v29 }
 0x200   :  { %1309 = vperm.xlu1 %2128, %v3305_v7   ;;  %v1254_v7 = vadd.f32 %v1222_v14, %v1058_v47  ;;  %v1466_v5 = vmax.f32 %v1434_v53, 0.0  ;;  %v267_v14 = vmul.f32 %v3948_v4, %v3974_v31  ;;  %v3984_v31 = vld [vmem:[#allocation56_spill] sm:$0xff] }
 0x202   :  { %v459_v47 = vadd.f32 %v3976_v12, %v267_v14  ;;  %v621_v14 = vmul.f32 %v3952_v23, %v3984_v31  ;;  %v3985_v12 = vld [vmem:[#allocation24_spill] sm:$0xff] }
 0x203   :  { %v1354_v43 = vpop.permute.xlu1 %1353 }
 0x204   :  { %v1418_v3 = vmul.f32 %v3114_v34, %v1354_v43  ;;  %2129 = vset.pattern.permute.xlu1 %v3794_v48  ;;  %v3975_v43 = vld [vmem:[#allocation57_spill] sm:$0xff] }
 0x205   :  { %797 = vperm.xlu1 %2129, %v3384_v28   ;;  %v623_v35 = vmul.f32 %v3952_v23, %v3975_v43 }
 0x206   :  { %v1450_v33 = vadd.f32 %v1418_v3, %v1254_v7  ;;  %v3977_v7 = vld [vmem:[#allocation94_spill] sm:$0xff] }
 0x207   :  { %v1358_v0 = vpop.permute.xlu1 %1357  ;;  %v655_v3 = vadd.f32 %v623_v35, %v459_v47  ;;  %v1210_v47 = vmul.f32 %v3092_v22, %v3985_v12  ;;  %v3997_v12 = vld [vmem:[#allocation59_spill] sm:$0xff] }
 0x208   :  { %v1419_v2 = vmul.f32 %v3114_v34, %v1358_v0  ;;  %v1482_v46 = vmax.f32 %v1450_v33, 0.0  ;;  %v1015_v0 = vmul.f32 %v2991_v21, %v3977_v7 }
 0x209   :  { %2130 = vset.pattern.permute.xlu1 %v3806_v60 }
 0x20a   :  { %v1451_v30 = vadd.f32 %v1419_v2, %v1255_v17  ;;  %1181 = vperm.xlu1 %2130, %v3330_v51  }
 0x20c   :  { %v1483_v10 = vmax.f32 %v1451_v30, 0.0  ;;  %v3390_v36 = vpop.permute.xlu1 %909 }
 0x20e   :  { %1185 = vperm.xlu1 %2130, %v3223_v55   ;;  %v2017_v44 = vpack.c.bf16 %v1483_v10, %v1482_v46  ;;  %v3979_v10 = vld [vmem:[#allocation45_spill] sm:$0xff] }
 0x210   :  { %2018 = vmatprep.subr.bf16.mxu0 %v2017_v44 }
 0x211   :  { %v1294_v24 = vpop.permute.xlu1 %1293 }
 0x212   :  { %v1403_v26 = vmul.f32 %v3114_v34, %v1294_v24  ;;  %2132 = vset.pattern.permute.xlu1 %v3794_v48 }
 0x213   :  { %737 = vperm.xlu1 %2132, %v2156_v20  }
 0x214   :  { %v1435_v18 = vadd.f32 %v1403_v26, %v1239_v11  ;;  %v3981_v11 = vld [vmem:[#allocation87_spill] sm:$0xff] }
 0x216   :  { %v1467_v52 = vmax.f32 %v1435_v18, 0.0  ;;  %v782_v42 = vpop.permute.xlu1 %781 }
 0x217   :  { %v834_v37 = vmul.f32 %v2881_v59, %v782_v42  ;;  %2133 = vset.pattern.permute.xlu1 %v3806_v60 }
 0x218   :  { %1121 = vperm.xlu1 %2133, %v3287_v16   ;;  %v2019_v48 = vpack.c.bf16 %v1467_v52, %v1466_v5 }
 0x219   :  { %v3410_v58 = vadd.f32 %v834_v37, %v670_v6 }
 0x21a   :  { %2020 = vmatpush3.bf16.msra.mxu0 %v2019_v48 }
 0x21b   :  { %v1166_v38 = vpop.permute.xlu1 %1165 }
 0x21c   :  { %2134 = vset.pattern.permute.xlu1 %v3954_v56  ;;  %v1224_v53 = vmul.f32 %v3092_v22, %v1166_v38  ;;  %v3983_v38 = vld [vmem:[#allocation5_spill] sm:$0xff] }
 0x21d   :  { %993 = vperm.xlu1 %2134, %v3384_v28  }
 0x21f   :  { %v1170_v39 = vpop.permute.xlu1 %1169 }
 0x220   :  { %v1225_v18 = vmul.f32 %v3092_v22, %v1170_v39  ;;  %v265_v39 = vmul.f32 %v3948_v4, %v3983_v38 }
 0x221   :  { %2135 = vset.pattern.permute.xlu1 %v3956_v29 }
 0x222   :  { %1377 = vperm.xlu1 %2135, %v3330_v51   ;;  %v284_v51 = vmul.f32 %v3948_v4, %v3978_v62  ;;  %v1257_v6 = vadd.f32 %v1225_v18, %v3311_v41  ;;  %v3992_v18 = vld [vmem:[#allocation9_spill] sm:$0xff] }
 0x224   :  { %v722_v50 = vpop.permute.xlu1 %721  ;;  %v476_v1 = vadd.f32 %v3979_v10, %v284_v51 }
 0x225   :  { %v819_v33 = vmul.f32 %v2881_v59, %v722_v50 }
 0x226   :  { %1381 = vperm.xlu1 %2135, %v3223_v55   ;;  %v3980_v55 = vld [vmem:[#allocation90_spill] sm:$0xff] }
 0x227   :  { %v851_v17 = vadd.f32 %v819_v33, %v655_v3  ;;  %v836_v44 = vmul.f32 %v2881_v59, %v3980_v55  ;;  %v817_v3 = vmul.f32 %v2881_v59, %v3335_v27  ;;  %v3988_v27 = vmov 0  }
 0x229   :  { %v1106_v2 = vpop.permute.xlu1 %1105  ;;  %v3425_v30 = vadd.f32 %v1015_v0, %v851_v17  ;;  %v3987_v0 = vld [vmem:[#allocation89_spill] sm:$0xff] }
 0x22a   :  { %2137 = vset.pattern.permute.xlu1 %v3954_v56  ;;  %v1028_v56 = vmul.f32 %v2991_v21, %v3366_v19 }
 0x22b   :  { %933 = vperm.xlu1 %2137, %v2156_v20  }
 0x22e   :  { %v594_v46 = vpop.permute.xlu1 %593 }
 0x22f   :  { %v640_v49 = vmul.f32 %v3952_v23, %v594_v46  ;;  %2138 = vset.pattern.permute.xlu1 %v3956_v29 }
 0x230   :  { %1317 = vperm.xlu1 %2138, %v3287_v16   ;;  %v1060_v16 = vadd.f32 %v1028_v56, %v3981_v11 }
 0x231   :  { %v672_v15 = vadd.f32 %v640_v49, %v476_v1 }
 0x232   :  { %v1256_v19 = vadd.f32 %v1224_v53, %v1060_v16  ;;  %v3990_v53 = vld [vmem:[#allocation72_spill] sm:$0xff] }
 0x233   :  { %v3438_v8 = vpop.permute.xlu1 %977  ;;  %v3440_v24 = vadd.f32 %v836_v44, %v672_v15  ;;  %v641_v54 = vmul.f32 %v3952_v23, %v3990_v53  ;;  %v3991_v16 = vld [vmem:[#allocation44_spill] sm:$0xff] }
 0x234   :  { %2139 = vset.pattern.permute.xlu1 %v3806_v60  ;;  %v2157_v60 = vld [vmem:[%s3751_s1 + $0x70] sm:$0xff]  ;;  %v1452_v42 = vadd.f32 %v1420_v63, %v1256_v19 }
 0x235   :  { %1189 = vperm.xlu1 %2139, %v3384_v28  }
 0x236   :  { %v1484_v43 = vmax.f32 %v1452_v42, 0.0 }
 0x237   :  { %v982_v26 = vpop.permute.xlu1 %981 }
 0x238   :  { %v1031_v9 = vmul.f32 %v2991_v21, %v982_v26  ;;  %v1493_v26 = vld [vmem:[%s3753_s3 + $0x8] sm:$0xff] }
 0x239   :  { %1125 = vperm.xlu1 %2139, %v2157_v60   ;;  %1684 = vmatprep.mubr.f32.mxu0 %v1493_v26  ;;  %v1231_v26 = vmul.f32 %v3092_v22, %v3200_v25 }
 0x23a   :  { %v1063_v28 = vadd.f32 %v1031_v9, %v3368_v40 }
 0x23c   :  { %v1366_v5 = vpop.permute.xlu1 %1365  ;;  %v3455_v52 = vadd.f32 %v1227_v32, %v1063_v28  ;;  %v3993_v28 = vld [vmem:[#allocation95_spill] sm:$0xff] }
 0x23d   :  { %v1421_v37 = vmul.f32 %v3114_v34, %v1366_v5  ;;  %1129 = vperm.xlu1 %2139, %v2156_v20   ;;  %v3986_v20 = vld [vmem:[#allocation27_spill] sm:$0xff]  ;;  %v1033_v5 = vmul.f32 %v2991_v21, %v3993_v28 }
 0x23e   :  { %v457_v50 = vadd.f32 %v3986_v20, %v265_v39  ;;  %v3995_v39 = vld [vmem:[#allocation58_spill] sm:$0xff] }
 0x23f   :  { %v1453_v48 = vadd.f32 %v1421_v37, %v1257_v6  ;;  %v624_v31 = vmul.f32 %v3952_v23, %v3995_v39  ;;  %v3998_v20 = vld [vmem:[#allocation30_spill] sm:$0xff] }
 0x240   :  { %v653_v17 = vadd.f32 %v621_v14, %v457_v50 }
 0x241   :  { %v1485_v35 = vmax.f32 %v1453_v48, 0.0  ;;  %2141 = vset.pattern.permute.xlu1 %v3956_v29  ;;  %v914_v40 = vpop.permute.xlu1 %913  ;;  %v1013_v29 = vmul.f32 %v2991_v21, %v3390_v36  ;;  %v3989_v36 = vld [vmem:[#allocation16_spill] sm:$0xff]  ;;  %v3994_v48 = vld [vmem:[#allocation31_spill] sm:$0xff] }
 0x242   :  { %v1014_v41 = vmul.f32 %v2991_v21, %v914_v40  ;;  %1389 = vperm.xlu1 %2141, %v3320_v57   ;;  %v849_v46 = vadd.f32 %v817_v3, %v653_v17  ;;  %v1209_v57 = vmul.f32 %v3092_v22, %v1106_v2  ;;  %v285_v56 = vmul.f32 %v3948_v4, %v3989_v36  ;;  %v3999_v3 = vld [vmem:[#allocation97_spill] sm:$0xff] }
 0x243   :  { %v2021_v7 = vpack.c.bf16 %v1485_v35, %v1484_v43  ;;  %v3996_v43 = vld [vmem:[#allocation8_spill] sm:$0xff] }
 0x244   :  { %v1046_v33 = vadd.f32 %v1014_v41, %v3987_v0  ;;  %v1045_v1 = vadd.f32 %v1013_v29, %v849_v46  ;;  %v477_v2 = vadd.f32 %v3991_v16, %v285_v56  ;;  %v269_v35 = vmul.f32 %v3948_v4, %v3996_v43 }
 0x245   :  { %2022 = vmatprep.subr.bf16.mxu0 %v2021_v7  ;;  %v1016_v7 = vmul.f32 %v2991_v21, %v3999_v3  ;;  %v1212_v0 = vmul.f32 %v3092_v22, %v3173_v61  ;;  %v4002_v61 = vld [vmem:[#allocation91_spill] sm:$0xff] }
 0x246   :  { %v3474_v62 = vadd.f32 %v1210_v47, %v1046_v33  ;;  %1321 = vperm.xlu1 %2141, %v2157_v60   ;;  %v1298_v51 = vpop.permute.xlu1 %1297  ;;  %v1241_v55 = vadd.f32 %v1209_v57, %v1045_v1  ;;  %v268_v60 = vmul.f32 %v3948_v4, %v3992_v18  ;;  %v625_v47 = vmul.f32 %v3952_v23, %v3997_v12 }
 0x247   :  { %v1404_v10 = vmul.f32 %v3114_v34, %v1298_v51  ;;  %v461_v50 = vadd.f32 %v3998_v20, %v269_v35  ;;  %v839_v56 = vmul.f32 %v2881_v59, %v4002_v61  ;;  %v1536_v61 = vld [vmem:[%s3754_s4 + $0x60] sm:$0xff] }
 0x248   :  { %v460_v38 = vadd.f32 %v3994_v48, %v268_v60  ;;  %v1306_v48 = vpop.permute.xlu0 %1305 }
 0x249   :  { %v1436_v44 = vadd.f32 %v1404_v10, %v3339_v45  ;;  %v673_v45 = vadd.f32 %v641_v54, %v477_v2  ;;  %v657_v29 = vadd.f32 %v625_v47, %v461_v50  ;;  %v4003_v54 = vld [vmem:[#allocation98_spill] sm:$0xff] }
 0x24a   :  { %v1302_v49 = vpop.permute.xlu1 %1301  ;;  %2142 = vset.pattern.permute.xlu1 %v3988_v27  ;;  %v656_v40 = vadd.f32 %v624_v31, %v460_v38 }
 0x24b   :  { %v1405_v15 = vmul.f32 %v3114_v34, %v1302_v49  ;;  %v1468_v13 = vmax.f32 %v1436_v44, 0.0  ;;  %v4000_v49 = vld [vmem:[#allocation18_spill] sm:$0xff] }
 0x24c   :  { %v287_v27 = vmul.f32 %v3948_v4, %v4000_v49  ;;  %v4001_v44 = vld [vmem:[#allocation46_spill] sm:$0xff]  ;;  %v1531_v49 = vld [vmem:[%s3754_s4 + $0x38] sm:$0xff] }
 0x24d   :  { %v1437_v11 = vadd.f32 %v1405_v15, %v1241_v55 }
 0x24e   :  { %v479_v15 = vadd.f32 %v4001_v44, %v287_v27 }
 0x24f   :  { %v1469_v32 = vmax.f32 %v1437_v11, 0.0  ;;  %v794_v9 = vpop.permute.xlu1 %793  ;;  %v1035_v11 = vmul.f32 %v2991_v21, %v4003_v54 }
 0x250   :  { %v837_v19 = vmul.f32 %v2881_v59, %v794_v9 }
 0x251   :  { %v2023_v63 = vpack.c.bf16 %v1469_v32, %v1468_v13  ;;  %v1030_v13 = vmul.f32 %v2991_v21, %v3438_v8 }
 0x252   :  { %v869_v42 = vadd.f32 %v837_v19, %v673_v45 }
 0x253   :  { %2024 = vmatpush3.bf16.msra.mxu0 %v2023_v63  ;;  %v1062_v63 = vadd.f32 %v1030_v13, %v3410_v58 }
 0x254   :  { %v1174_v6 = vpop.permute.xlu1 %1173  ;;  %v3494_v37 = vadd.f32 %v1033_v5, %v869_v42 }
 0x255   :  { %v1226_v9 = vmul.f32 %v3092_v22, %v1174_v6  ;;  %v1406_v6 = vmul.f32 %v3114_v34, %v1306_v48 }
 0x257   :  { %v1258_v60 = vadd.f32 %v1226_v9, %v1062_v63  ;;  %v1438_v43 = vadd.f32 %v1406_v6, %v3474_v62  ;;  %v1526_v62 = vld [vmem:[%s3754_s4 + $0x10] sm:$0xff] }
 0x259   :  { %v726_v14 = vpop.permute.xlu1 %725 }
 0x25a   :  { %v820_v41 = vmul.f32 %v2881_v59, %v726_v14 }
 0x25c   :  { %v852_v33 = vadd.f32 %v820_v41, %v656_v40 }
 0x25d   :  { %v730_v17 = vpop.permute.xlu1 %729 }
 0x25e   :  { %v1048_v51 = vadd.f32 %v1016_v7, %v852_v33  ;;  %v821_v46 = vmul.f32 %v2881_v59, %v730_v17  ;;  %v1524_v7 = vld [vmem:[%s3754_s4] sm:$0xff]  ;;  %v1527_v17 = vld [vmem:[%s3754_s4 + $0x18] sm:$0xff] }
 0x25f   :  { %1542 = vperm.xlu1 %2142, %v1524_v7  }
 0x260   :  { %v3510_v57 = vadd.f32 %v821_v46, %v657_v29  ;;  %v3512_v10 = vadd.f32 %v1212_v0, %v1048_v51  ;;  %v1528_v0 = vld [vmem:[%s3754_s4 + $0x20] sm:$0xff]  ;;  %v1530_v29 = vld [vmem:[%s3754_s4 + $0x30] sm:$0xff]  ;;  %v1529_v46 = vld [vmem:[%s3754_s4 + $0x28] sm:$0xff] }
 0x262   :  { %v1114_v1 = vpop.permute.xlu1 %1113 }
 0x263   :  { %v1211_v31 = vmul.f32 %v3092_v22, %v1114_v1  ;;  %1552 = vperm.xlu1 %2142, %v1526_v62   ;;  %v1532_v1 = vld [vmem:[%s3754_s4 + $0x40] sm:$0xff] }
 0x265   :  { %v1243_v35 = vadd.f32 %v1211_v31, %v3425_v30  ;;  %v1525_v30 = vld [vmem:[%s3754_s4 + $0x8] sm:$0xff]  ;;  %v4004_v31 = vld [vmem:[#allocation19_spill] sm:$0xff] }
 0x266   :  { %1547 = vperm.xlu0 %2143, %v1525_v30  }
 0x267   :  { %v606_v55 = vpop.permute.xlu1 %605  ;;  %1557 = vperm.xlu1 %2142, %v1527_v17  }
 0x268   :  { %v643_v36 = vmul.f32 %v3952_v23, %v606_v55  ;;  %v1534_v55 = vld [vmem:[%s3754_s4 + $0x50] sm:$0xff] }
 0x26a   :  { %v675_v53 = vadd.f32 %v643_v36, %v479_v15  ;;  %1562 = vperm.xlu0 %2143, %v1528_v0   ;;  %v1533_v15 = vld [vmem:[%s3754_s4 + $0x48] sm:$0xff] }
 0x26b   :  { %1567 = vperm.xlu1 %2142, %v1529_v46  }
 0x26c   :  { %v871_v16 = vadd.f32 %v839_v56, %v675_v53  ;;  %v986_v2 = vpop.permute.xlu1 %985 }
 0x26d   :  { %v1032_v44 = vmul.f32 %v2991_v21, %v986_v2 }
 0x26e   :  { %v1067_v32 = vadd.f32 %v1035_v11, %v871_v16  ;;  %1572 = vperm.xlu0 %2143, %v1530_v29   ;;  %v1535_v16 = vld [vmem:[%s3754_s4 + $0x58] sm:$0xff]  ;;  %v4008_v29 = vld [vmem:[#allocation60_spill] sm:$0xff] }
 0x26f   :  { %1577 = vperm.xlu1 %2142, %v1531_v49   ;;  %v1064_v53 = vadd.f32 %v1032_v44, %v3440_v24 }
 0x270   :  { %v3527_v45 = vadd.f32 %v1231_v26, %v1067_v32  ;;  %v1538_v26 = vld [vmem:[%s3754_s4 + $0x70] sm:$0xff] }
 0x271   :  { %v1370_v19 = vpop.permute.xlu1 %1369 }
 0x272   :  { %v1422_v18 = vmul.f32 %v3114_v34, %v1370_v19  ;;  %1582 = vperm.xlu0 %2143, %v1532_v1   ;;  %v1537_v19 = vld [vmem:[%s3754_s4 + $0x68] sm:$0xff] }
 0x273   :  { %1587 = vperm.xlu1 %2142, %v1533_v15  }
 0x274   :  { %v1454_v5 = vadd.f32 %v1422_v18, %v1258_v60  ;;  %v1782_v18 = vld [vmem:[%s3756_s6] sm:$0xff]  ;;  %v1314_v60 = vpop.permute.xlu0 %1313 }
 0x275   :  { %v1374_v28 = vpop.permute.xlu1 %1373  ;;  %v1408_v48 = vmul.f32 %v3114_v34, %v1314_v60 }
 0x276   :  { %v1423_v42 = vmul.f32 %v3114_v34, %v1374_v28  ;;  %v1486_v38 = vmax.f32 %v1454_v5, 0.0  ;;  %1592 = vperm.xlu0 %2143, %v1534_v55   ;;  %v4009_v55 = vld [vmem:[#allocation32_spill] sm:$0xff] }
 0x277   :  { %1597 = vperm.xlu1 %2142, %v1535_v16  }
 0x278   :  { %v1455_v25 = vadd.f32 %v1423_v42, %v3455_v52  ;;  %v1470_v52 = vmax.f32 %v1438_v43, 0.0  ;;  %v1386_v15 = vpop.permute.xlu0 %1385 }
 0x27a   :  { %v1487_v8 = vmax.f32 %v1455_v25, 0.0  ;;  %v3533_v39 = vpop.permute.xlu1 %925  ;;  %1602 = vperm.xlu0 %2143, %v1536_v61   ;;  %v1539_v25 = vld [vmem:[%s3754_s4 + $0x78] sm:$0xff] }
 0x27b   :  { %v1017_v28 = vmul.f32 %v2991_v21, %v3533_v39  ;;  %1607 = vperm.xlu1 %2142, %v1537_v19   ;;  %v286_v39 = vmul.f32 %v3948_v4, %v4004_v31  ;;  %v4010_v19 = vld [vmem:[#allocation100_spill] sm:$0xff]  ;;  %v1498_v31 = vld [vmem:[%s3753_s3 + $0x30] sm:$0xff] }
 0x27c   :  { %v2025_v14 = vpack.c.bf16 %v1487_v8, %v1486_v38  ;;  %v1326_v16 = vpop.permute.xlu0 %1325 }
 0x27d   :  { %v1049_v6 = vadd.f32 %v1017_v28, %v3510_v57 }
 0x27e   :  { %2026 = vmatprep.subr.bf16.mxu0 %v2025_v14  ;;  %1612 = vperm.xlu0 %2143, %v1538_v26  }
 0x27f   :  { %v1310_v58 = vpop.permute.xlu1 %1309  ;;  %1617 = vperm.xlu1 %2142, %v1539_v25  }
 0x280   :  { %v1407_v40 = vmul.f32 %v3114_v34, %v1310_v58  ;;  %v1440_v58 = vadd.f32 %v1408_v48, %v3512_v10  ;;  %v4007_v10 = vld [vmem:[#allocation10_spill] sm:$0xff]  ;;  %v1492_v48 = vld [vmem:[%s3753_s3] sm:$0xff] }
 0x281   :  { %v271_v17 = vmul.f32 %v3948_v4, %v4007_v10  ;;  %v1516_v10 = vld [vmem:[%s3753_s3 + $0xc0] sm:$0xff] }
 0x282   :  { %v1439_v12 = vadd.f32 %v1407_v40, %v1243_v35  ;;  %1785 = vperm.xlu0 %2143, %v1782_v18  }
 0x283   :  { %v463_v44 = vadd.f32 %v4009_v55, %v271_v17  ;;  %v1519_v17 = vld [vmem:[%s3753_s3 + $0xd8] sm:$0xff]  ;;  %v2188_v55 = vmov 0.0|0.0  }
 0x284   :  { %v1471_v47 = vmax.f32 %v1439_v12, 0.0  ;;  %v3540_v41 = vpop.permute.xlu1 %797  ;;  %v4005_v12 = vld [vmem:[#allocation47_spill] sm:$0xff]  ;;  %2037 = vmatprep.subr.bf16.mxu1 %v2188_v55 }
 0x285   :  { %v838_v7 = vmul.f32 %v2881_v59, %v3540_v41 }
 0x286   :  { %v2027_v20 = vpack.c.bf16 %v1471_v47, %v1470_v52  ;;  %v478_v52 = vadd.f32 %v4005_v12, %v286_v39  ;;  %v4006_v47 = vld [vmem:[#allocation74_spill] sm:$0xff]  ;;  %v1501_v39 = vld [vmem:[%s3753_s3 + $0x48] sm:$0xff]  ;;  %v1507_v12 = vld [vmem:[%s3753_s3 + $0x78] sm:$0xff] }
 0x288   :  { %2028 = vmatpush3.bf16.msra.mxu0 %v2027_v20  ;;  %v642_v20 = vmul.f32 %v3952_v23, %v4006_v47  ;;  %v1509_v47 = vld [vmem:[%s3753_s3 + $0x88] sm:$0xff] }
 0x289   :  { %v1182_v50 = vpop.permute.xlu1 %1181 }
 0x28a   :  { %v1228_v36 = vmul.f32 %v3092_v22, %v1182_v50  ;;  %v1472_v50 = vmax.f32 %v1440_v58, 0.0  ;;  %v674_v62 = vadd.f32 %v642_v20, %v478_v52  ;;  %v1503_v58 = vld [vmem:[%s3753_s3 + $0x58] sm:$0xff]  ;;  %v1506_v52 = vld [vmem:[%s3753_s3 + $0x70] sm:$0xff]  ;;  %v1508_v20 = vld [vmem:[%s3753_s3 + $0x80] sm:$0xff] }
 0x28c   :  { %v1260_v2 = vadd.f32 %v1228_v36, %v1064_v53  ;;  %v870_v1 = vadd.f32 %v838_v7, %v674_v62  ;;  %v1512_v7 = vld [vmem:[%s3753_s3 + $0xa0] sm:$0xff]  ;;  %v1514_v62 = vld [vmem:[%s3753_s3 + $0xb0] sm:$0xff] }
 0x28d   :  { %v1186_v3 = vpop.permute.xlu1 %1185 }
 0x28e   :  { %v1229_v54 = vmul.f32 %v3092_v22, %v1186_v3 }
 0x290   :  { %v1261_v32 = vadd.f32 %v1229_v54, %v3494_v37  ;;  %v1426_v54 = vmul.f32 %v3114_v34, %v1386_v15 }
 0x292   :  { %v3554_v33 = vpop.permute.xlu1 %737 }
 0x293   :  { %v823_v41 = vmul.f32 %v2881_v59, %v3554_v33  ;;  %v1411_v33 = vmul.f32 %v3114_v34, %v1326_v16 }
 0x297   :  { %v1122_v51 = vpop.permute.xlu1 %1121 }
 0x298   :  { %v1213_v38 = vmul.f32 %v3092_v22, %v1122_v51  ;;  %v627_v51 = vmul.f32 %v3952_v23, %v4008_v29  ;;  %v1518_v29 = vld [vmem:[%s3753_s3 + $0xd0] sm:$0xff] }
 0x29a   :  { %v1245_v43 = vadd.f32 %v1213_v38, %v1049_v6  ;;  %v659_v61 = vadd.f32 %v627_v51, %v463_v44  ;;  %v1497_v38 = vld [vmem:[%s3753_s3 + $0x28] sm:$0xff]  ;;  %v1499_v6 = vld [vmem:[%s3753_s3 + $0x38] sm:$0xff]  ;;  %v2190_v44 = vmov 0.0  }
 0x29b   :  { %v1521_v51 = vld [vmem:[%s3753_s3 + $0xe8] sm:$0xff]  ;;  %2002 = vmatprep.mubr.msk.f32.mxu1 %vm2189_vm0, %v2190_v44 }
 0x29c   :  { %v994_v27 = vpop.permute.xlu1 %993  ;;  %v855_v53 = vadd.f32 %v823_v41, %v659_v61 }
 0x29d   :  { %v1034_v0 = vmul.f32 %v2991_v21, %v994_v27 }
 0x29f   :  { %v1066_v36 = vadd.f32 %v1034_v0, %v870_v1  ;;  %v1517_v0 = vld [vmem:[%s3753_s3 + $0xc8] sm:$0xff]  ;;  %v1523_v1 = vld [vmem:[%s3753_s3 + $0xf8] sm:$0xff] }
 0x2a1   :  { %v1378_v56 = vpop.permute.xlu1 %1377 }
 0x2a2   :  { %v1424_v11 = vmul.f32 %v3114_v34, %v1378_v56 }
 0x2a4   :  { %v1456_v9 = vadd.f32 %v1424_v11, %v1260_v2 }
 0x2a5   :  { %v1382_v13 = vpop.permute.xlu1 %1381 }
 0x2a6   :  { %v1425_v24 = vmul.f32 %v3114_v34, %v1382_v13  ;;  %v1488_v5 = vmax.f32 %v1456_v9, 0.0 }
 0x2a8   :  { %v1457_v63 = vadd.f32 %v1425_v24, %v1261_v32 }
 0x2aa   :  { %v1489_v37 = vmax.f32 %v1457_v63, 0.0  ;;  %v934_v42 = vpop.permute.xlu1 %933 }
 0x2ab   :  { %v1019_v27 = vmul.f32 %v2991_v21, %v934_v42 }
 0x2ac   :  { %v2029_v8 = vpack.c.bf16 %v1489_v37, %v1488_v5 }
 0x2ad   :  { %v1051_v11 = vadd.f32 %v1019_v27, %v855_v53 }
 0x2ae   :  { %2030 = vmatprep.subr.bf16.mxu0 %v2029_v8  ;;  %v1496_v8 = vld [vmem:[%s3753_s3 + $0x20] sm:$0xff] }
 0x2af   :  { %v1318_v14 = vpop.permute.xlu1 %1317 }
 0x2b0   :  { %v1409_v35 = vmul.f32 %v3114_v34, %v1318_v14  ;;  %v1500_v14 = vld [vmem:[%s3753_s3 + $0x40] sm:$0xff] }
 0x2b2   :  { %v1441_v40 = vadd.f32 %v1409_v35, %v1245_v43  ;;  %v1502_v43 = vld [vmem:[%s3753_s3 + $0x50] sm:$0xff]  ;;  %v1505_v35 = vld [vmem:[%s3753_s3 + $0x68] sm:$0xff] }
 0x2b4   :  { %v1473_v3 = vmax.f32 %v1441_v40, 0.0  ;;  %v1190_v57 = vpop.permute.xlu1 %1189  ;;  %v1504_v40 = vld [vmem:[%s3753_s3 + $0x60] sm:$0xff] }
 0x2b5   :  { %v1230_v49 = vmul.f32 %v3092_v22, %v1190_v57  ;;  %v1513_v57 = vld [vmem:[%s3753_s3 + $0xa8] sm:$0xff] }
 0x2b6   :  { %v2031_v30 = vpack.c.bf16 %v1473_v3, %v1472_v50  ;;  %v1511_v50 = vld [vmem:[%s3753_s3 + $0x98] sm:$0xff]  ;;  %v1510_v3 = vld [vmem:[%s3753_s3 + $0x90] sm:$0xff] }
 0x2b7   :  { %v1262_v4 = vadd.f32 %v1230_v49, %v1066_v36  ;;  %v1522_v49 = vld [vmem:[%s3753_s3 + $0xf0] sm:$0xff] }
 0x2b8   :  { %v1126_v46 = vpop.permute.xlu1 %1125  ;;  %2032 = vmatpush3.bf16.msra.mxu0 %v2031_v30  ;;  %v1515_v30 = vld [vmem:[%s3753_s3 + $0xb8] sm:$0xff] }
 0x2b9   :  { %v1458_v2 = vadd.f32 %v1426_v54, %v1262_v4  ;;  %v1214_v13 = vmul.f32 %v3092_v22, %v1126_v46  ;;  %v1520_v46 = vld [vmem:[%s3753_s3 + $0xe0] sm:$0xff] }
 0x2bb   :  { %v1490_v9 = vmax.f32 %v1458_v2, 0.0  ;;  %v1246_v63 = vadd.f32 %v1214_v13, %v4010_v19 }
 0x2bc   :  { %v1130_v56 = vpop.permute.xlu1 %1129 }
 0x2bd   :  { %v1215_v23 = vmul.f32 %v3092_v22, %v1130_v56 }
 0x2bf   :  { %v1247_v32 = vadd.f32 %v1215_v23, %v1051_v11 }
 0x2c1   :  { %v1390_v26 = vpop.permute.xlu1 %1389  ;;  %v1443_v18 = vadd.f32 %v1411_v33, %v1247_v32 }
 0x2c2   :  { %v1427_v59 = vmul.f32 %v3114_v34, %v1390_v26 }
 0x2c3   :  { %v1475_v42 = vmax.f32 %v1443_v18, 0.0 }
 0x2c4   :  { %v1459_v21 = vadd.f32 %v1427_v59, %v3527_v45  ;;  %v1495_v45 = vld [vmem:[%s3753_s3 + $0x18] sm:$0xff] }
 0x2c5   :  { %v1322_v24 = vpop.permute.xlu1 %1321 }
 0x2c6   :  { %v1491_v60 = vmax.f32 %v1459_v21, 0.0  ;;  %v1410_v28 = vmul.f32 %v3114_v34, %v1322_v24  ;;  %v1494_v34 = vld [vmem:[%s3753_s3 + $0x10] sm:$0xff] }
 0x2c8   :  { %v1442_v5 = vadd.f32 %v1410_v28, %v1246_v63  ;;  %v2033_v37 = vpack.c.bf16 %v1491_v60, %v1490_v9 }
 0x2ca   :  { %v1474_v25 = vmax.f32 %v1442_v5, 0.0  ;;  %2034 = vmatprep.subr.bf16.mxu0 %v2033_v37 }
 0x2cc   :  { %v2035_v22 = vpack.c.bf16 %v1475_v42, %v1474_v25 }
 0x2ce   :  { %2036 = vmatpush3.bf16.msra.mxu0 %v2035_v22 }
 0x2d1   :  { %1685 = vmatmul.mubr.f32.vlgmr.msra.gmra.mrb[0].mxu0 %v1492_v48 }
 0x2d2   :  { %1689 = vmatprep.mubr.f32.mxu0 %v1495_v45 }
 0x2d5   :  { %1690 = vmatmul.mubr.f32.gmra.mrb[2].mxu0 %v1494_v34 }
 0x2d6   :  { %1694 = vmatprep.mubr.f32.mxu0 %v1497_v38 }
 0x2d9   :  { %1695 = vmatmul.mubr.f32.gmra.mrb[4].mxu0 %v1496_v8 }
 0x2da   :  { %1699 = vmatprep.mubr.f32.mxu0 %v1499_v6 }
 0x2dd   :  { %1700 = vmatmul.mubr.f32.gmra.mrb[6].mxu0 %v1498_v31 }
 0x2de   :  { %1704 = vmatprep.mubr.f32.mxu0 %v1501_v39  ;;  %v1543_v61 = vpop.permute.xlu1 %1542 }
 0x2e1   :  { %1705 = vmatmul.mubr.f32.gmra.mrb[8].mxu0 %v1500_v14 }
 0x2e2   :  { %1709 = vmatprep.mubr.f32.mxu0 %v1503_v58  ;;  %v1553_v16 = vpop.permute.xlu1 %1552 }
 0x2e5   :  { %1710 = vmatmul.mubr.f32.gmra.mrb[10].mxu0 %v1502_v43  ;;  %v1548_v4 = vpop.permute.xlu0 %1547 }
 0x2e6   :  { %1714 = vmatprep.mubr.f32.mxu0 %v1505_v35  ;;  %v1558_v19 = vpop.permute.xlu1 %1557 }
 0x2e9   :  { %1715 = vmatmul.mubr.f32.gmra.mrb[12].mxu0 %v1504_v40  ;;  %v1563_v22 = vpop.permute.xlu0 %1562 }
 0x2ea   :  { %1719 = vmatprep.mubr.f32.mxu0 %v1507_v12  ;;  %v1568_v38 = vpop.permute.xlu1 %1567 }
 0x2ed   :  { %1720 = vmatmul.mubr.f32.gmra.mrb[14].mxu0 %v1506_v52  ;;  %v1573_v40 = vpop.permute.xlu0 %1572 }
 0x2ee   :  { %1724 = vmatprep.mubr.f32.mxu0 %v1509_v47 }
 0x2f1   :  { %1725 = vmatmul.mubr.f32.gmra.mrb[16].mxu0 %v1508_v20  ;;  %v1578_v20 = vpop.permute.xlu1 %1577 }
 0x2f2   :  { %1729 = vmatprep.mubr.f32.mxu0 %v1511_v50 }
 0x2f5   :  { %1730 = vmatmul.mubr.f32.gmra.mrb[18].mxu0 %v1510_v3 }
 0x2f6   :  { %1734 = vmatprep.mubr.f32.mxu0 %v1513_v57 }
 0x2f9   :  { %1735 = vmatmul.mubr.f32.gmra.mrb[20].mxu0 %v1512_v7 }
 0x2fa   :  { %1739 = vmatprep.mubr.f32.mxu0 %v1515_v30 }
 0x2fd   :  { %1740 = vmatmul.mubr.f32.gmra.mrb[22].mxu0 %v1514_v62 }
 0x2fe   :  { %1744 = vmatprep.mubr.f32.mxu0 %v1517_v0 }
 0x301   :  { %1745 = vmatmul.mubr.f32.gmra.mrb[24].mxu0 %v1516_v10 }
 0x302   :  { %1749 = vmatprep.mubr.f32.mxu0 %v1519_v17  ;;  %v1583_v17 = vpop.permute.xlu0 %1582 }
 0x305   :  { %1750 = vmatmul.mubr.f32.gmra.mrb[26].mxu0 %v1518_v29 }
 0x306   :  { %1754 = vmatprep.mubr.f32.mxu0 %v1521_v51 }
 0x309   :  { %1755 = vmatmul.mubr.f32.gmra.mrb[28].mxu0 %v1520_v46 }
 0x30a   :  { %1759 = vmatprep.mubr.f32.mxu0 %v1523_v1  ;;  %v1588_v1 = vpop.permute.xlu1 %1587 }
 0x30d   :  { %1760 = vmatmul.mubr.f32.gmra.mrb[30].mxu0 %v1522_v49 }
 0x3a4   :  { %v1905_v41 = vpop.f32.mrb[0].mxu0 }
 0x3a5   :  { %v1906_v15 = vpop.f32.mrb[1].mxu0 }
 0x3a6   :  { %v1907_v36 = vadd.f32 %v1906_v15, %v1905_v41 }
 0x3a8   :  { %v1908_v27 = vpop.f32.mrb[2].mxu0  ;;  %v1687_v53 = vadd.f32 %v1907_v36, %v1543_v61 }
 0x3a9   :  { %v1909_v56 = vpop.f32.mrb[3].mxu0 }
 0x3aa   :  { %v1910_v23 = vadd.f32 %v1909_v56, %v1908_v27  ;;  %v1765_v26 = vmax.f32 %v1687_v53, 0.0 }
 0x3ac   :  { %v1692_v54 = vadd.f32 %v1910_v23, %v1548_v4  ;;  %v1911_v11 = vpop.f32.mrb[4].mxu0  ;;  %v1593_v4 = vpop.permute.xlu0 %1592 }
 0x3ad   :  { %v1912_v2 = vpop.f32.mrb[5].mxu0 }
 0x3ae   :  { %v1766_v13 = vmax.f32 %v1692_v54, 0.0  ;;  %v1913_v32 = vadd.f32 %v1912_v2, %v1911_v11  ;;  %v1598_v11 = vpop.permute.xlu1 %1597 }
 0x3b0   :  { %v1914_v59 = vpop.f32.mrb[6].mxu0  ;;  %v2038_v33 = vpack.c.bf16 %v1766_v13, %v1765_v26  ;;  %v1697_v9 = vadd.f32 %v1913_v32, %v1553_v16 }
 0x3b1   :  { %v1915_v21 = vpop.f32.mrb[7].mxu0 }
 0x3b2   :  { %v1916_v24 = vadd.f32 %v1915_v21, %v1914_v59  ;;  %2039 = vmatpush3.bf16.msra.mxu1 %v2038_v33  ;;  %v1767_v28 = vmax.f32 %v1697_v9, 0.0  ;;  %v1603_v9 = vpop.permute.xlu0 %1602 }
 0x3b3   :  { %2040 = vmatprep.subr.bf16.mxu1 %v2188_v55 }
 0x3b4   :  { %v1702_v63 = vadd.f32 %v1916_v24, %v1558_v19  ;;  %v1917_v18 = vpop.f32.mrb[8].mxu0 }
 0x3b5   :  { %v1918_v60 = vpop.f32.mrb[9].mxu0 }
 0x3b6   :  { %v1768_v5 = vmax.f32 %v1702_v63, 0.0  ;;  %v1919_v37 = vadd.f32 %v1918_v60, %v1917_v18  ;;  %v1608_v18 = vpop.permute.xlu1 %1607 }
 0x3b8   :  { %v1920_v42 = vpop.f32.mrb[10].mxu0  ;;  %v2041_v25 = vpack.c.bf16 %v1768_v5, %v1767_v28  ;;  %v1707_v45 = vadd.f32 %v1919_v37, %v1563_v22 }
 0x3b9   :  { %v1921_v48 = vpop.f32.mrb[11].mxu0 }
 0x3ba   :  { %v1922_v34 = vadd.f32 %v1921_v48, %v1920_v42  ;;  %2042 = vmatpush3.bf16.msra.mxu1 %v2041_v25  ;;  %v1769_v39 = vmax.f32 %v1707_v45, 0.0  ;;  %v1613_v45 = vpop.permute.xlu0 %1612 }
 0x3bb   :  { %2043 = vmatprep.subr.bf16.mxu1 %v2188_v55 }
 0x3bc   :  { %v1712_v8 = vadd.f32 %v1922_v34, %v1568_v38  ;;  %v1923_v6 = vpop.f32.mrb[12].mxu0 }
 0x3bd   :  { %v1924_v31 = vpop.f32.mrb[13].mxu0 }
 0x3be   :  { %v1770_v14 = vmax.f32 %v1712_v8, 0.0  ;;  %v1925_v58 = vadd.f32 %v1924_v31, %v1923_v6  ;;  %v1618_v6 = vpop.permute.xlu1 %1617 }
 0x3c0   :  { %v1926_v43 = vpop.f32.mrb[14].mxu0  ;;  %v2044_v35 = vpack.c.bf16 %v1770_v14, %v1769_v39  ;;  %v1717_v52 = vadd.f32 %v1925_v58, %v1573_v40 }
 0x3c1   :  { %v1927_v12 = vpop.f32.mrb[15].mxu0 }
 0x3c2   :  { %v1928_v47 = vadd.f32 %v1927_v12, %v1926_v43  ;;  %2045 = vmatpush3.bf16.msra.mxu1 %v2044_v35  ;;  %v1771_v7 = vmax.f32 %v1717_v52, 0.0  ;;  %v1781_v43 = vld [vmem:[%s3755_s5] sm:$0xff]  ;;  %v1786_v35 = vpop.permute.xlu0 %1785 }
 0x3c3   :  { %2046 = vmatprep.subr.bf16.mxu1 %v2188_v55 }
 0x3c4   :  { %v1722_v50 = vadd.f32 %v1928_v47, %v1578_v20  ;;  %v1929_v3 = vpop.f32.mrb[16].mxu0 }
 0x3c5   :  { %v1930_v57 = vpop.f32.mrb[17].mxu0 }
 0x3c6   :  { %v1772_v30 = vmax.f32 %v1722_v50, 0.0  ;;  %v1931_v62 = vadd.f32 %v1930_v57, %v1929_v3 }
 0x3c8   :  { %v1932_v0 = vpop.f32.mrb[18].mxu0  ;;  %v2047_v10 = vpack.c.bf16 %v1772_v30, %v1771_v7  ;;  %v1727_v51 = vadd.f32 %v1931_v62, %v1583_v17 }
 0x3c9   :  { %v1933_v29 = vpop.f32.mrb[19].mxu0 }
 0x3ca   :  { %v1934_v46 = vadd.f32 %v1933_v29, %v1932_v0  ;;  %2048 = vmatpush3.bf16.msra.mxu1 %v2047_v10  ;;  %v1773_v15 = vmax.f32 %v1727_v51, 0.0 }
 0x3cb   :  { %2049 = vmatprep.subr.bf16.mxu1 %v2188_v55 }
 0x3cc   :  { %v1732_v49 = vadd.f32 %v1934_v46, %v1588_v1  ;;  %v1935_v44 = vpop.f32.mrb[20].mxu0 }
 0x3cd   :  { %v1936_v41 = vpop.f32.mrb[21].mxu0 }
 0x3ce   :  { %v1774_v36 = vmax.f32 %v1732_v49, 0.0  ;;  %v1937_v61 = vadd.f32 %v1936_v41, %v1935_v44 }
 0x3d0   :  { %v1938_v27 = vpop.f32.mrb[22].mxu0  ;;  %v2050_v56 = vpack.c.bf16 %v1774_v36, %v1773_v15  ;;  %v1737_v23 = vadd.f32 %v1937_v61, %v1593_v4 }
 0x3d1   :  { %v1939_v53 = vpop.f32.mrb[23].mxu0 }
 0x3d2   :  { %v1940_v54 = vadd.f32 %v1939_v53, %v1938_v27  ;;  %2051 = vmatpush3.bf16.msra.mxu1 %v2050_v56  ;;  %v1775_v13 = vmax.f32 %v1737_v23, 0.0 }
 0x3d3   :  { %2052 = vmatprep.subr.bf16.mxu1 %v2188_v55 }
 0x3d4   :  { %v1742_v16 = vadd.f32 %v1940_v54, %v1598_v11  ;;  %v1941_v2 = vpop.f32.mrb[24].mxu0 }
 0x3d5   :  { %v1942_v26 = vpop.f32.mrb[25].mxu0 }
 0x3d6   :  { %v1776_v32 = vmax.f32 %v1742_v16, 0.0  ;;  %v1943_v59 = vadd.f32 %v1942_v26, %v1941_v2 }
 0x3d8   :  { %v1944_v33 = vpop.f32.mrb[26].mxu0  ;;  %v2053_v21 = vpack.c.bf16 %v1776_v32, %v1775_v13  ;;  %v1747_v19 = vadd.f32 %v1943_v59, %v1603_v9 }
 0x3d9   :  { %v1945_v24 = vpop.f32.mrb[27].mxu0 }
 0x3da   :  { %v1946_v63 = vadd.f32 %v1945_v24, %v1944_v33  ;;  %2054 = vmatpush3.bf16.msra.mxu1 %v2053_v21  ;;  %v1777_v37 = vmax.f32 %v1747_v19, 0.0 }
 0x3db   :  { %2055 = vmatprep.subr.bf16.mxu1 %v2188_v55 }
 0x3dc   :  { %v1752_v60 = vadd.f32 %v1946_v63, %v1608_v18  ;;  %v1947_v28 = vpop.f32.mrb[28].mxu0 }
 0x3dd   :  { %v1948_v5 = vpop.f32.mrb[29].mxu0 }
 0x3de   :  { %v1778_v42 = vmax.f32 %v1752_v60, 0.0  ;;  %v1949_v25 = vadd.f32 %v1948_v5, %v1947_v28 }
 0x3e0   :  { %v1950_v22 = vpop.f32.mrb[30].mxu0  ;;  %v2056_v48 = vpack.c.bf16 %v1778_v42, %v1777_v37  ;;  %v1757_v38 = vadd.f32 %v1949_v25, %v1613_v45 }
 0x3e1   :  { %v1951_v34 = vpop.f32.mrb[31].mxu0 }
 0x3e2   :  { %v1952_v8 = vadd.f32 %v1951_v34, %v1950_v22  ;;  %2057 = vmatpush3.bf16.msra.mxu1 %v2056_v48  ;;  %v1779_v39 = vmax.f32 %v1757_v38, 0.0 }
 0x3e3   :  { %2058 = vmatprep.subr.bf16.mxu1 %v2188_v55 }
 0x3e4   :  { %v1762_v31 = vadd.f32 %v1952_v8, %v1618_v6 }
 0x3e6   :  { %v1780_v14 = vmax.f32 %v1762_v31, 0.0 }
 0x3e8   :  { %v2059_v58 = vpack.c.bf16 %v1780_v14, %v1779_v39 }
 0x3ea   :  { %2060 = vmatpush3.bf16.msra.mxu1 %v2059_v58 }
 0x3ed   :  { %2003 = vmatmul.mubr.f32.vlgmr.msra.gmra.mrb[0].mxu1 %v1781_v43 }
 0x4c0   :  { %v1854_v40 = vpop.f32.mrb[0].mxu1 }
 0x4c1   :  { %v1855_v12 = vadd.f32 %v1854_v40, %v1786_v35  ;;  %v2004_v52 = vpop.f32.mrb[1].mxu1 }
 0x4c3   :  { %1858 = vst [vmem:[#allocation2] sm:$0xff] %v1855_v12 }
 0x4c4   :  { %2169 = shalt.err (!%p2166_p4)
}
 0x4c5   :  { %s2170_s5 = scalar_lea.hbm %s3757_s7, 128 }
 0x4c6   :  { %p2171_p5 = scmp.ne.s32.totalorder %s3757_s7, %s2170_s5  ;;  %p2174_p6 = scmp.lt.u32.totalorder %s2170_s5, %s3757_s7 }
 0x4c8   :  { %p2176_p7 = pnand %p2174_p6, %p2171_p5 }
 0x4ca   :  { %2179 = shalt.err (!%p2176_p7)
}
 0x4cb   :  { %1868 = dma.vmem_to_hbm [thread:$0]  %s1866_s9, 128, %s3757_s7, [#allocation3]  }
 0x4cc   :  { %2180 = dma.done.wait [#allocation3], 128  }
 0x4cd   :  { %2181 = vsyncadd [#allocation3], 4294967168 }
 0x4ce   :  { %1872 = vsyncpa [#allocation3], 1 }

</bundles_post_ra>
